<compile_context>
chip_gen: v5e
topology: v5e:2x2
jax: 0.10.0
libtpu: 0.0.40
codegen_flags: <defaults>
</compile_context>

<pallas_src>
import jax
import jax.numpy as jnp
from jax.experimental import pallas as pl
from jax.experimental.pallas import tpu as pltpu

# ---- module hyperparameters (from the PyTorch script) ----
block_size = 125
n_embd = 16
head_size = n_embd          # Head(n_embd, dropout_value)
hidden = 500                # nn.Linear(n_embd, 500)
vocab_size = 65             # stand-in for len(chars); `text` is not provided in-script
dropout_value = 0.2         # eval mode -> identity

# ---- padded sizes used inside the kernel ----
TP = 128                    # padded sequence length (block_size -> 128)
VP = 128                    # padded vocab (65 -> 128)
HIDP = 512                  # padded hidden (500 -> 512)


def lm_kernel(q_ref, k_ref, vh_ref, mask_ref, b1_ref, w2_ref, b2_ref, out_ref):
    """Forward for NB sequences: causal single-head attention -> folded MLP."""
    NB, T_, H = q_ref.shape            # (NB, TP, head_size)
    HID = vh_ref.shape[-1]             # HIDP
    V_ = w2_ref.shape[-1]              # VP

    # wei = q @ k^T ; the *head_size**0.5 scale is folded into the Q table.
    wei = jnp.einsum('bqd,bkd->bqk', q_ref[...], k_ref[...],
                     preferred_element_type=jnp.float32)          # (NB, TP, TP) f32

    # additive causal mask (0 / -1e30, precomputed bf16, resident in VMEM)
    wei = wei + mask_ref[...][None, :, :]

    # softmax along last axis (f32; reciprocal on the EUP slot)
    wei = wei - jnp.max(wei, axis=-1, keepdims=True)
    p = jnp.exp(wei)
    wei = p * pl.reciprocal(jnp.sum(p, axis=-1, keepdims=True), approx=True)
    # dropout(p=0.2): eval-mode identity

    # h = relu( wei @ (x @ Wv @ W1) + b1 )   -- Wv@W1 folded in the wrapper,
    # so this is a full-width (TP,TP)@(TP,HIDP) MXU matmul per sequence.
    h = jnp.einsum('bqk,bkh->bqh', wei.astype(jnp.bfloat16), vh_ref[...],
                   preferred_element_type=jnp.float32)            # (NB, TP, HIDP)
    h = h.reshape(NB * T_, HID) + b1_ref[...]
    h = jnp.maximum(h, 0.0).astype(jnp.bfloat16)

    logits = jnp.dot(h, w2_ref[...],
                     preferred_element_type=jnp.float32) + b2_ref[...]  # (NB*TP, VP)
    out_ref[...] = logits.reshape(NB, T_, V_).astype(out_ref.dtype)     # bf16 store


def init_params(key):
    """Deterministic parameter init. Linear weights stored transposed (in, out)."""
    ks = jax.random.split(key, 8)
    p = {
        "tok_emb": jax.random.normal(ks[0], (vocab_size, n_embd), jnp.float32),
        "pos_emb": jax.random.normal(ks[1], (block_size, n_embd), jnp.float32),
        "wk": jax.random.normal(ks[2], (n_embd, head_size), jnp.float32) / jnp.sqrt(n_embd),
        "wq": jax.random.normal(ks[3], (n_embd, head_size), jnp.float32) / jnp.sqrt(n_embd),
        "wv": jax.random.normal(ks[4], (n_embd, head_size), jnp.float32) / jnp.sqrt(n_embd),
        "w1": jax.random.normal(ks[5], (n_embd, hidden), jnp.float32) / jnp.sqrt(n_embd),
        "b1": jnp.zeros((1, hidden), jnp.float32),
        "w2": jax.random.normal(ks[6], (hidden, vocab_size), jnp.float32) / jnp.sqrt(hidden),
        "b2": jnp.zeros((1, vocab_size), jnp.float32),
    }
    return p


def _fold_params(params):
    """Fold embedding->QKV->W1 chains and pad to kernel-friendly shapes (f32 math)."""
    scale = head_size ** 0.5                      # module multiplies by sqrt -- kept
    wq_s = params["wq"] * scale                   # fold scale into Q projection
    wv_w1 = params["wv"] @ params["w1"]           # (n_embd, hidden)  Wv @ W1 fold

    tok_q = params["tok_emb"] @ wq_s              # (V, H)
    tok_k = params["tok_emb"] @ params["wk"]      # (V, H)
    tok_vh = params["tok_emb"] @ wv_w1            # (V, hidden)
    pos_q = params["pos_emb"] @ wq_s              # (T, H)
    pos_k = params["pos_emb"] @ params["wk"]      # (T, H)
    pos_vh = params["pos_emb"] @ wv_w1            # (T, hidden)

    b1 = jnp.zeros((1, HIDP), jnp.float32).at[:, :hidden].set(params["b1"])
    w2 = jnp.zeros((HIDP, VP), jnp.float32).at[:hidden, :vocab_size].set(
        params["w2"]).astype(jnp.bfloat16)
    b2 = jnp.zeros((1, VP), jnp.float32).at[:, :vocab_size].set(params["b2"])

    # additive causal mask: 0 where allowed (j <= i), -1e30 where masked
    row = jax.lax.broadcasted_iota(jnp.int32, (TP, TP), 0)
    col = jax.lax.broadcasted_iota(jnp.int32, (TP, TP), 1)
    mask_add = jnp.where(col <= row, 0.0, -1e30).astype(jnp.bfloat16)

    return (tok_q, tok_k, tok_vh, pos_q, pos_k, pos_vh, b1, w2, b2, mask_add)


def _pick_nb(B):
    """Generation-aware sequences-per-grid-step (NB)."""
    cap = 16                                      # ~16 MiB working set; fits all gens
    try:
        kind = jax.devices()[0].device_kind.lower()
    except Exception:
        kind = ""
    if "v7" in kind and B >= 2:
        # v7x: 2 TensorCores -> keep an even grid >= 2 so both get work
        return min(cap, -(-B // 2))
    # v5e / v6e: single TensorCore -> grid=1 when the batch fits
    return min(cap, B)


def language_model_forward(idx, params, targets=None):
    """idx: (B, T) int32 with T == block_size. Returns (logits, loss)."""
    B, T = idx.shape
    assert T == block_size, "positional-embedding broadcast requires T == block_size"

    NB = _pick_nb(B)
    B_pad = ((B + NB - 1) // NB) * NB

    (tok_q, tok_k, tok_vh, pos_q, pos_k, pos_vh,
     b1, w2, b2, mask_add) = _fold_params(params)

    idx32 = idx.astype(jnp.int32)
    # XLA-side row gather from the folded tables + positional add (exact fold of
    # (tok_emb[idx] + pos_emb) @ {Wq*s, Wk, Wv@W1}); then pad seq/hidden dims.
    q_seq = jnp.take(tok_q, idx32, axis=0) + pos_q[None, :, :]     # (B, T, H)
    k_seq = jnp.take(tok_k, idx32, axis=0) + pos_k[None, :, :]     # (B, T, H)
    vh_seq = jnp.take(tok_vh, idx32, axis=0) + pos_vh[None, :, :]  # (B, T, hidden)

    q_in = jnp.zeros((B_pad, TP, head_size), jnp.float32
                     ).at[:B, :T].set(q_seq).astype(jnp.bfloat16)
    k_in = jnp.zeros((B_pad, TP, head_size), jnp.float32
                     ).at[:B, :T].set(k_seq).astype(jnp.bfloat16)
    vh_in = jnp.zeros((B_pad, TP, HIDP), jnp.float32
                      ).at[:B, :T, :hidden].set(vh_seq).astype(jnp.bfloat16)

    # advisory cost estimate for XLA scheduling around the custom call
    flops = 2 * B_pad * TP * (TP * head_size + TP * HIDP + HIDP * VP)
    transcendentals = B_pad * TP * TP
    bytes_accessed = (B_pad * TP * (2 * head_size + HIDP) * 2   # q,k,vh bf16 in
                      + B_pad * TP * VP * 2                      # logits bf16 out
                      + TP * TP * 2 + HIDP * VP * 2              # mask + w2
                      + HIDP * 4 + VP * 4)                       # biases

    out = pl.pallas_call(
        lm_kernel,
        out_shape=jax.ShapeDtypeStruct((B_pad, TP, VP), jnp.bfloat16),
        grid_spec=pltpu.PrefetchScalarGridSpec(
            num_scalar_prefetch=0,
            grid=(B_pad // NB,),
            in_specs=[
                pl.BlockSpec((NB, TP, head_size), lambda b: (b, 0, 0)),  # q
                pl.BlockSpec((NB, TP, head_size), lambda b: (b, 0, 0)),  # k
                pl.BlockSpec((NB, TP, HIDP), lambda b: (b, 0, 0)),       # x@Wv@W1
                pl.BlockSpec((TP, TP), lambda b: (0, 0)),                # additive mask
                pl.BlockSpec((1, HIDP), lambda b: (0, 0)),               # b1
                pl.BlockSpec((HIDP, VP), lambda b: (0, 0)),              # W2
                pl.BlockSpec((1, VP), lambda b: (0, 0)),                 # b2
            ],
            out_specs=pl.BlockSpec((NB, TP, VP), lambda b: (b, 0, 0)),
        ),
        compiler_params=pltpu.CompilerParams(
            dimension_semantics=("parallel",),
            vmem_limit_bytes=32 * 1024 * 1024),
        cost_estimate=pl.CostEstimate(flops=flops,
                                      transcendentals=transcendentals,
                                      bytes_accessed=bytes_accessed),
    )(q_in, k_in, vh_in, mask_add, b1, w2, b2)

    logits = out[:B, :T, :vocab_size].astype(jnp.float32)          # (B, T, V) f32

    loss = None
    if targets is not None:
        # Mirror the PyTorch path: reshape to (B*T, C) and mean cross-entropy.
        lg = logits.reshape(B * T, vocab_size)
        tg = targets.reshape(B * T).astype(jnp.int32)
        logz = jax.nn.logsumexp(lg, axis=-1)
        picked = jnp.take_along_axis(lg, tg[:, None], axis=-1)[:, 0]
        loss = jnp.mean(logz - picked)
        logits = lg

    # TODO(synk): generate()'s multinomial sampling loop is host-side control
    # flow and is not implemented as a kernel.
    return logits, loss


if __name__ == "__main__":
    key = jax.random.PRNGKey(0)
    pkey, ikey = jax.random.split(key)
    params = init_params(pkey)

    B = 2
    idx = jax.random.randint(ikey, (B, block_size), 0, vocab_size, dtype=jnp.int32)

    logits, loss = language_model_forward(idx, params)
    logits = jax.block_until_ready(logits)

    assert logits.shape == (B, block_size, vocab_size)
    assert bool(jnp.all(jnp.isfinite(logits)))
    assert loss is None
    print("KERNEL_OK")
</pallas_src>

<mosaic_0001>
module attributes {stable_mosaic.version = 11 : i64} {
  func.func @lm_kernel(%arg0: i32, %arg1: memref<2x128x16xbf16, #tpu.memory_space<vmem>>, %arg2: memref<2x128x16xbf16, #tpu.memory_space<vmem>>, %arg3: memref<2x128x512xbf16, #tpu.memory_space<vmem>>, %arg4: memref<128x128xbf16, #tpu.memory_space<vmem>>, %arg5: memref<1x512xf32, #tpu.memory_space<vmem>>, %arg6: memref<512x128xbf16, #tpu.memory_space<vmem>>, %arg7: memref<1x128xf32, #tpu.memory_space<vmem>>, %arg8: memref<2x128x128xbf16, #tpu.memory_space<vmem>>) attributes {dimension_semantics = [#tpu.dimension_semantics<parallel>], iteration_bounds = array<i64: 1>, scalar_prefetch = 0 : i64, scratch_operands = 0 : i64, tpu.core_type = #tpu.core_type<tc>, window_params = [{transform_indices = @transform_0, window_bounds = array<i64: 2, 128, 16>}, {transform_indices = @transform_1, window_bounds = array<i64: 2, 128, 16>}, {transform_indices = @transform_2, window_bounds = array<i64: 2, 128, 512>}, {pipeline_mode = #tpu.pipeline_mode<synchronous>, transform_indices = @transform_3, window_bounds = array<i64: 128, 128>}, {pipeline_mode = #tpu.pipeline_mode<synchronous>, transform_indices = @transform_4, window_bounds = array<i64: 1, 512>}, {pipeline_mode = #tpu.pipeline_mode<synchronous>, transform_indices = @transform_5, window_bounds = array<i64: 512, 128>}, {pipeline_mode = #tpu.pipeline_mode<synchronous>, transform_indices = @transform_6, window_bounds = array<i64: 1, 128>}, {transform_indices = @transform_7, window_bounds = array<i64: 2, 128, 128>}]} {
    %c0 = arith.constant 0 : index
    %c0_0 = arith.constant 0 : index
    %c0_1 = arith.constant 0 : index
    %0 = vector.load %arg1[%c0, %c0_0, %c0_1] : memref<2x128x16xbf16, #tpu.memory_space<vmem>>, vector<2x128x16xbf16>
    %c0_2 = arith.constant 0 : index
    %c0_3 = arith.constant 0 : index
    %c0_4 = arith.constant 0 : index
    %1 = vector.load %arg2[%c0_2, %c0_3, %c0_4] : memref<2x128x16xbf16, #tpu.memory_space<vmem>>, vector<2x128x16xbf16>
    "tpu.trace_start"() <{level = 10 : i32, message = "bqd,bkd->bqk"}> : () -> ()
    %cst = arith.constant dense<0.000000e+00> : vector<2x128x128xf32>
    %2 = tpu.matmul %0, %1, %cst {dimension_numbers = #tpu.dot_dimension_numbers<[2], [2], [1], [1], [0, 0, 0, 1, 1, 1], [0], [0]>} : vector<2x128x16xbf16>, vector<2x128x16xbf16>, vector<2x128x128xf32> -> vector<2x128x128xf32>
    "tpu.trace_stop"() : () -> ()
    %c0_5 = arith.constant 0 : index
    %c0_6 = arith.constant 0 : index
    %3 = vector.load %arg4[%c0_5, %c0_6] : memref<128x128xbf16, #tpu.memory_space<vmem>>, vector<128x128xbf16>
    %4 = vector.shape_cast %3 : vector<128x128xbf16> to vector<1x128x128xbf16>
    %5 = arith.extf %4 : vector<1x128x128xbf16> to vector<1x128x128xf32>
    %6 = vector.broadcast %5 : vector<1x128x128xf32> to vector<2x128x128xf32>
    %7 = arith.addf %2, %6 : vector<2x128x128xf32>
    %cst_7 = arith.constant dense<0xFF800000> : vector<2x128xf32>
    %8 = vector.multi_reduction <maximumf>, %7, %cst_7 [2] : vector<2x128x128xf32> to vector<2x128xf32>
    %9 = vector.shape_cast %8 : vector<2x128xf32> to vector<2x128x1xf32>
    %10 = vector.broadcast %9 : vector<2x128x1xf32> to vector<2x128x128xf32>
    %11 = arith.subf %7, %10 : vector<2x128x128xf32>
    %12 = math.exp %11 : vector<2x128x128xf32>
    %cst_8 = arith.constant dense<0.000000e+00> : vector<2x128xf32>
    %13 = vector.multi_reduction <add>, %12, %cst_8 [2] : vector<2x128x128xf32> to vector<2x128xf32>
    %14 = vector.shape_cast %13 : vector<2x128xf32> to vector<2x128x1xf32>
    %15 = tpu.reciprocal %14 {approx = true} : vector<2x128x1xf32> -> vector<2x128x1xf32>
    %16 = vector.broadcast %15 : vector<2x128x1xf32> to vector<2x128x128xf32>
    %17 = arith.mulf %12, %16 : vector<2x128x128xf32>
    %18 = arith.truncf %17 : vector<2x128x128xf32> to vector<2x128x128xbf16>
    %c0_9 = arith.constant 0 : index
    %c0_10 = arith.constant 0 : index
    %c0_11 = arith.constant 0 : index
    %19 = vector.load %arg3[%c0_9, %c0_10, %c0_11] : memref<2x128x512xbf16, #tpu.memory_space<vmem>>, vector<2x128x512xbf16>
    "tpu.trace_start"() <{level = 10 : i32, message = "bqk,bkh->bqh"}> : () -> ()
    %cst_12 = arith.constant dense<0.000000e+00> : vector<2x128x512xf32>
    %20 = tpu.matmul %18, %19, %cst_12 {dimension_numbers = #tpu.dot_dimension_numbers<[2], [1], [1], [2], [0, 0, 0, 1, 1, 2], [0], [0]>} : vector<2x128x128xbf16>, vector<2x128x512xbf16>, vector<2x128x512xf32> -> vector<2x128x512xf32>
    "tpu.trace_stop"() : () -> ()
    %21 = vector.shape_cast %20 : vector<2x128x512xf32> to vector<256x512xf32>
    %c0_13 = arith.constant 0 : index
    %c0_14 = arith.constant 0 : index
    %22 = vector.load %arg5[%c0_13, %c0_14] : memref<1x512xf32, #tpu.memory_space<vmem>>, vector<1x512xf32>
    %23 = vector.broadcast %22 : vector<1x512xf32> to vector<256x512xf32>
    %24 = arith.addf %21, %23 : vector<256x512xf32>
    %cst_15 = arith.constant 0.000000e+00 : f32
    %25 = vector.broadcast %cst_15 : f32 to vector<256x512xf32>
    %26 = arith.maximumf %24, %25 : vector<256x512xf32>
    %27 = arith.truncf %26 : vector<256x512xf32> to vector<256x512xbf16>
    %c0_16 = arith.constant 0 : index
    %c0_17 = arith.constant 0 : index
    %28 = vector.load %arg6[%c0_16, %c0_17] : memref<512x128xbf16, #tpu.memory_space<vmem>>, vector<512x128xbf16>
    %cst_18 = arith.constant dense<0.000000e+00> : vector<256x128xf32>
    %29 = tpu.matmul %27, %28, %cst_18 {dimension_numbers = #tpu.dot_dimension_numbers<[1], [0], [0], [1], [0, 0, 1, 1], [], []>} : vector<256x512xbf16>, vector<512x128xbf16>, vector<256x128xf32> -> vector<256x128xf32>
    %c0_19 = arith.constant 0 : index
    %c0_20 = arith.constant 0 : index
    %30 = vector.load %arg7[%c0_19, %c0_20] : memref<1x128xf32, #tpu.memory_space<vmem>>, vector<1x128xf32>
    %31 = vector.broadcast %30 : vector<1x128xf32> to vector<256x128xf32>
    %32 = arith.addf %29, %31 : vector<256x128xf32>
    %33 = vector.shape_cast %32 : vector<256x128xf32> to vector<2x128x128xf32>
    %34 = arith.truncf %33 : vector<2x128x128xf32> to vector<2x128x128xbf16>
    %c0_21 = arith.constant 0 : index
    %c0_22 = arith.constant 0 : index
    %c0_23 = arith.constant 0 : index
    %35 = vector.load %arg8[%c0_21, %c0_22, %c0_23] : memref<2x128x128xbf16, #tpu.memory_space<vmem>>, vector<2x128x128xbf16>
    tpu.vector_store %arg8[%c0_21, %c0_22, %c0_23], %34 {strides = array<i32>} : memref<2x128x128xbf16, #tpu.memory_space<vmem>>, vector<2x128x128xbf16>,
    return
  }
  func.func @transform_0(%arg0: i32) -> (i32, i32, i32) {
    %c0_i32 = arith.constant 0 : i32
    %c0_i32_0 = arith.constant 0 : i32
    %c0_i32_1 = arith.constant 0 : i32
    return %arg0, %c0_i32, %c0_i32_0 : i32, i32, i32
  }
  func.func @transform_1(%arg0: i32) -> (i32, i32, i32) {
    %c0_i32 = arith.constant 0 : i32
    %c0_i32_0 = arith.constant 0 : i32
    %c0_i32_1 = arith.constant 0 : i32
    return %arg0, %c0_i32, %c0_i32_0 : i32, i32, i32
  }
  func.func @transform_2(%arg0: i32) -> (i32, i32, i32) {
    %c0_i32 = arith.constant 0 : i32
    %c0_i32_0 = arith.constant 0 : i32
    %c0_i32_1 = arith.constant 0 : i32
    return %arg0, %c0_i32, %c0_i32_0 : i32, i32, i32
  }
  func.func @transform_3(%arg0: i32) -> (i32, i32) {
    %c0_i32 = arith.constant 0 : i32
    %c0_i32_0 = arith.constant 0 : i32
    %c0_i32_1 = arith.constant 0 : i32
    return %c0_i32, %c0_i32_0 : i32, i32
  }
  func.func @transform_4(%arg0: i32) -> (i32, i32) {
    %c0_i32 = arith.constant 0 : i32
    %c0_i32_0 = arith.constant 0 : i32
    %c0_i32_1 = arith.constant 0 : i32
    return %c0_i32, %c0_i32_0 : i32, i32
  }
  func.func @transform_5(%arg0: i32) -> (i32, i32) {
    %c0_i32 = arith.constant 0 : i32
    %c0_i32_0 = arith.constant 0 : i32
    %c0_i32_1 = arith.constant 0 : i32
    return %c0_i32, %c0_i32_0 : i32, i32
  }
  func.func @transform_6(%arg0: i32) -> (i32, i32) {
    %c0_i32 = arith.constant 0 : i32
    %c0_i32_0 = arith.constant 0 : i32
    %c0_i32_1 = arith.constant 0 : i32
    return %c0_i32, %c0_i32_0 : i32, i32
  }
  func.func @transform_7(%arg0: i32) -> (i32, i32, i32) {
    %c0_i32 = arith.constant 0 : i32
    %c0_i32_0 = arith.constant 0 : i32
    %c0_i32_1 = arith.constant 0 : i32
    return %arg0, %c0_i32, %c0_i32_0 : i32, i32, i32
  }
}

</mosaic_0001>

<bundles_post_ra>
// kernel: tpu_custom_call.1
= control target key start
LH: loop header
LB: loop body
LE: loop exit
PB: predicated region body
PF: predicated region fallthrough
CT: control target
= control target key end

     0   :  { %12 = vsyncpa [#allocation3], 0  ;;  %s4959_s0 = inlined_call_operand.vmem [shape: bf16[2,128,16], index: 0, kind: input, shape index: {}]   ;;  %s4960_s1 = inlined_call_operand.vmem [shape: bf16[2,128,16], index: 1, kind: input, shape index: {}]   ;;  %s4961_s2 = inlined_call_operand.hbm [shape: bf16[2,128,512], index: 2, kind: input, shape index: {}]   ;;  %s4962_s3 = inlined_call_operand.hbm [shape: bf16[128,128], index: 3, kind: input, shape index: {}]   ;;  %s4963_s4 = inlined_call_operand.vmem [shape: f32[1,512], index: 4, kind: input, shape index: {}]   ;;  %s4964_s5 = inlined_call_operand.vmem [shape: bf16[512,128], index: 5, kind: input, shape index: {}]   ;;  %s4965_s6 = inlined_call_operand.vmem [shape: f32[1,128], index: 6, kind: input, shape index: {}]   ;;  %s4966_s7 = inlined_call_operand.hbm [shape: bf16[2,128,128], index: 7, kind: output, shape index: {}]  }
   0x1   :  { %13 = vsyncpa [#allocation6], 0 }
   0x2   :  { %14 = vsyncpa [#allocation4], 0  ;;  %s23_s26 = sshll.u32 %s4961_s2, 4  ;;  %s3752_s27 = smov [#allocation2]   ;;  %s24_s26 = int_to_ptr.hbm [resolvable:$true] %s23_s26 }
   0x3   :  { %s25_s28 = sshll.u32 %s3752_s27, 4  ;;  %s36_s8 = sshll.u32 %s4962_s3, 4  ;;  %s26_s28 = int_to_ptr.vmem [resolvable:$true] %s25_s28  ;;  %s37_s8 = int_to_ptr.hbm [resolvable:$true] %s36_s8 }
   0x4   :  { %s3753_s9 = smov 256   ;;  %s3754_s10 = smov 16  }
   0x5   :  { %31 = dma.hbm_to_vmem [thread:$0]  %s24_s26, 8192, %s26_s28, [#allocation3], %s3753_s9, %s3753_s9, %s3754_s10  }
   0x6   :  { %s3755_s11 = smov [#allocation5]   ;;  %s3756_s13 = smov 64  }
   0x7   :  { %s38_s12 = sshll.u32 %s3755_s11, 4  ;;  %s3757_s14 = smov 4   ;;  %s39_s12 = int_to_ptr.vmem [resolvable:$true] %s38_s12 }
   0x8   :  { %44 = dma.hbm_to_vmem [thread:$0]  %s37_s8, 1024, %s39_s12, [#allocation6], %s3756_s13, %s3756_s13, %s3757_s14  }
   0x9   :  { %3746 = dma.done.wait [#allocation3], 8192  }
   0xa   :  { %3747 = vsyncadd [#allocation3], 4294959104 }
   0xb   :  { %3748 = dma.done.wait [#allocation6], 1024  }
   0xc   :  { %3749 = vsyncadd [#allocation6], 4294966272  ;;  %vm235_vm0 = vcmask 130048   ;;  %v3283_v0 = vld [vmem:[%s4960_s1 + $0x38] sm:$0xff]  ;;  %v3282_v2 = vld [vmem:[%s4960_s1 + $0x30] sm:$0xff]  ;;  %s2718_s24 = sshll.u32 %s4966_s7, 4  ;;  %s2719_s24 = int_to_ptr.hbm [resolvable:$true] %s2718_s24 }
   0xd   :  { %v282_v1 = vsel %vm235_vm0, %v3283_v0, 0  ;;  %v279_v3 = vsel %vm235_vm0, %v3282_v2, 0  ;;  %v3281_v4 = vld [vmem:[%s4960_s1 + $0x28] sm:$0xff]  ;;  %v3280_v6 = vld [vmem:[%s4960_s1 + $0x20] sm:$0xff]  ;;  %v3279_v8 = vld [vmem:[%s4960_s1 + $0x18] sm:$0xff] }
   0xe   :  { %284 = vmatpush.bf16.xpose.msra.mxu0 %v282_v1  ;;  %v276_v5 = vsel %vm235_vm0, %v3281_v4, 0  ;;  %v273_v7 = vsel %vm235_vm0, %v3280_v6, 0  ;;  %v270_v9 = vsel %vm235_vm0, %v3279_v8, 0  ;;  %v3278_v10 = vld [vmem:[%s4960_s1 + $0x10] sm:$0xff]  ;;  %v3277_v12 = vld [vmem:[%s4960_s1 + $0x8] sm:$0xff]  ;;  %v3276_v14 = vld [vmem:[%s4960_s1] sm:$0xff] }
   0xf   :  { %v267_v11 = vsel %vm235_vm0, %v3278_v10, 0  ;;  %v264_v13 = vsel %vm235_vm0, %v3277_v12, 0  ;;  %v261_v15 = vsel %vm235_vm0, %v3276_v14, 0  ;;  %v3260_v16 = vld [vmem:[%s4959_s0] sm:$0xff]  ;;  %v3261_v17 = vld [vmem:[%s4959_s0 + $0x8] sm:$0xff]  ;;  %v3262_v18 = vld [vmem:[%s4959_s0 + $0x10] sm:$0xff] }
  0x10   :  { %v3263_v19 = vld [vmem:[%s4959_s0 + $0x18] sm:$0xff]  ;;  %v3264_v20 = vld [vmem:[%s4959_s0 + $0x20] sm:$0xff]  ;;  %v3265_v21 = vld [vmem:[%s4959_s0 + $0x28] sm:$0xff] }
  0x11   :  { %v3266_v22 = vld [vmem:[%s4959_s0 + $0x30] sm:$0xff]  ;;  %v3267_v23 = vld [vmem:[%s4959_s0 + $0x38] sm:$0xff]  ;;  %v3897_v37 = vld [vmem:[#allocation5 + $0x20] sm:$0xff]  }
  0x12   :  { %v3884_v30 = vld [vmem:[#allocation5 + $0x18] sm:$0xff]   ;;  %v3406_v38 = vunpack.c.l.bf16 %v3897_v37  ;;  %v3407_v41 = vunpack.c.h.bf16 %v3897_v37  ;;  %v3911_v44 = vld [vmem:[#allocation5 + $0x28] sm:$0xff]   ;;  %v3290_v51 = vld [vmem:[%s4960_s1 + $0x70] sm:$0xff] }
  0x13   :  { %v3402_v31 = vunpack.c.l.bf16 %v3884_v30  ;;  %v3403_v34 = vunpack.c.h.bf16 %v3884_v30  ;;  %v3410_v45 = vunpack.c.l.bf16 %v3911_v44  ;;  %v3291_v48 = vld [vmem:[%s4960_s1 + $0x78] sm:$0xff]  ;;  %v3411_v49 = vunpack.c.h.bf16 %v3911_v44  ;;  %v3932_v54 = vld [vmem:[#allocation5 + $0x30] sm:$0xff]   ;;  %v3289_v57 = vld [vmem:[%s4960_s1 + $0x68] sm:$0xff] }
  0x14   :  { %v459_v50 = vsel %vm235_vm0, %v3291_v48, 0  ;;  %v456_v55 = vsel %vm235_vm0, %v3290_v51, 0  ;;  %v3414_v56 = vunpack.c.l.bf16 %v3932_v54  ;;  %v453_v60 = vsel %vm235_vm0, %v3289_v57, 0  ;;  %v3288_v62 = vld [vmem:[%s4960_s1 + $0x60] sm:$0xff]  ;;  %v3954_v1 = vld [vmem:[#allocation5 + $0x38] sm:$0xff]   ;;  %v3286_v8 = vld [vmem:[%s4960_s1 + $0x50] sm:$0xff] }
  0x15   :  { %461 = vmatpush.bf16.xpose.msra.mxu1 %v459_v50  ;;  %v3415_v61 = vunpack.c.h.bf16 %v3932_v54  ;;  %v450_v2 = vsel %vm235_vm0, %v3288_v62, 0  ;;  %v3287_v4 = vld [vmem:[%s4960_s1 + $0x58] sm:$0xff]  ;;  %v3285_v10 = vld [vmem:[%s4960_s1 + $0x48] sm:$0xff]  ;;  %v3284_v12 = vld [vmem:[%s4960_s1 + $0x40] sm:$0xff] }
  0x16   :  { %285 = vmatpush.bf16.xpose.msra.mxu0 %v279_v3  ;;  %v3418_v3 = vunpack.c.l.bf16 %v3954_v1  ;;  %v3268_v14 = vld [vmem:[%s4959_s0 + $0x40] sm:$0xff]  ;;  %v3321_v30 = vld [vmem:[#allocation2 + $0xec] sm:$0xf] }
  0x1d   :  { %462 = vmatpush.bf16.xpose.msra.mxu1 %v456_v55 }
  0x1e   :  { %286 = vmatpush.bf16.xpose.msra.mxu0 %v276_v5 }
  0x25   :  { %463 = vmatpush.bf16.xpose.msra.mxu1 %v453_v60 }
  0x26   :  { %287 = vmatpush.bf16.xpose.msra.mxu0 %v273_v7  ;;  %v447_v7 = vsel %vm235_vm0, %v3287_v4, 0 }
  0x2d   :  { %464 = vmatpush.bf16.xpose.msra.mxu1 %v450_v2 }
  0x2e   :  { %288 = vmatpush.bf16.xpose.msra.mxu0 %v270_v9  ;;  %v444_v9 = vsel %vm235_vm0, %v3286_v8, 0 }
  0x35   :  { %465 = vmatpush.bf16.xpose.msra.mxu1 %v447_v7 }
  0x36   :  { %289 = vmatpush.bf16.xpose.msra.mxu0 %v267_v11  ;;  %v441_v11 = vsel %vm235_vm0, %v3285_v10, 0  ;;  %v2990_v10 = vld [vmem:[#allocation2 + $0xe0] sm:$0xf] }
  0x3d   :  { %466 = vmatpush.bf16.xpose.msra.mxu1 %v444_v9 }
  0x3e   :  { %290 = vmatpush.bf16.xpose.msra.mxu0 %v264_v13  ;;  %v438_v13 = vsel %vm235_vm0, %v3284_v12, 0 }
  0x45   :  { %467 = vmatpush.bf16.xpose.msra.mxu1 %v441_v11  ;;  %v3322_v11 = vld [vmem:[#allocation2 + $0xec] sm:$0xf0] }
  0x46   :  { %291 = vmatpush.bf16.xpose.msra.mxu0 %v261_v15  ;;  %v2991_v12 = vor.u32 %v3322_v11, %v2990_v10  ;;  %v2958_v10 = vld [vmem:[#allocation2 + $0xa0] sm:$0xf]  ;;  %v3314_v11 = vld [vmem:[#allocation2 + $0xac] sm:$0xf0] }
  0x48   :  { %3522 = vmatpush.bf16.msra.mxu2 %v2991_v12 }
  0x4d   :  { %2796 = vmatmul.msk.bf16.vlgmr.msra.gmra.mxu0 %vm235_vm0, %v3260_v16  ;;  %468 = vmatpush.bf16.xpose.msra.mxu1 %v438_v13  ;;  %v3320_v13 = vld [vmem:[#allocation2 + $0xe4] sm:$0xf] }
  0x4e   :  { %1102 = vmatpush.bf16.msrb.mxu0 %v2991_v12  ;;  %v2959_v12 = vor.u32 %v3314_v11, %v2958_v10  ;;  %v2894_v10 = vld [vmem:[#allocation2 + $0x20] sm:$0xf]  ;;  %v3298_v11 = vld [vmem:[#allocation2 + $0x2c] sm:$0xf0] }
  0x54   :  { %2868 = vmatmul.msk.bf16.vlgmr.msra.gmra.mxu1 %vm235_vm0, %v3268_v14  ;;  %v2974_v14 = vld [vmem:[#allocation2 + $0xc0] sm:$0xf] }
  0x5d   :  { %2797 = vmatmul.msk.bf16.gmra.mxu0 %vm235_vm0, %v3261_v17 }
  0x6d   :  { %2798 = vmatmul.msk.bf16.gmra.mxu0 %vm235_vm0, %v3262_v18 }
  0x7d   :  { %2799 = vmatmul.msk.bf16.gmra.mxu0 %vm235_vm0, %v3263_v19 }
  0x8d   :  { %2800 = vmatmul.msk.bf16.gmra.mxu0 %vm235_vm0, %v3264_v20  ;;  %v3269_v20 = vld [vmem:[%s4959_s0 + $0x48] sm:$0xff] }
  0x8e   :  { %2869 = vmatmul.msk.bf16.gmra.mxu1 %vm235_vm0, %v3269_v20 }
  0x9d   :  { %2801 = vmatmul.msk.bf16.gmra.mxu0 %vm235_vm0, %v3265_v21 }
  0xad   :  { %2802 = vmatmul.msk.bf16.gmra.mxu0 %vm235_vm0, %v3266_v22 }
  0xbd   :  { %2803 = vmatmul.msk.bf16.gmra.mxu0 %vm235_vm0, %v3267_v23  ;;  %v3419_v23 = vunpack.c.h.bf16 %v3954_v1 }
  0xca   :  { %v3872_v24 = vpop.f32.mrf.mxu0 }
  0xd2   :  { %v3874_v25 = vpop.f32.mrf.mxu0 }
  0xda   :  { %v3876_v26 = vpop.f32.mrf.mxu0 }
  0xe2   :  { %v3878_v27 = vpop.f32.mrf.mxu0 }
  0xea   :  { %v3880_v28 = vpop.f32.mrf.mxu0 }
  0xf2   :  { %v3882_v29 = vpop.f32.mrf.mxu0 }
  0xfa   :  { %v308_v32 = vpop.f32.mrf.mxu0 }
  0xfb   :  { %v3889_v33 = vadd.f32 %v3402_v31, %v308_v32 }
  0xfd   :  { %522 = vmax.xlane.f32.xlu0 %v3889_v33 }
 0x102   :  { %v310_v35 = vpop.f32.mrf.mxu0 }
 0x103   :  { %v3895_v36 = vadd.f32 %v3403_v34, %v310_v35 }
 0x105   :  { %524 = vmax.xlane.f32.xlu0 %v3895_v36 }
 0x10a   :  { %v313_v39 = vpop.f32.mrf.mxu0 }
 0x10b   :  { %v3903_v40 = vadd.f32 %v3406_v38, %v313_v39 }
 0x10d   :  { %526 = vmax.xlane.f32.xlu1 %v3903_v40 }
 0x112   :  { %v315_v42 = vpop.f32.mrf.mxu0 }
 0x113   :  { %v3909_v43 = vadd.f32 %v3407_v41, %v315_v42  ;;  %v4001_v42 = vld [vmem:[#allocation5] sm:$0xff]  }
 0x114   :  { %v3390_v48 = vunpack.c.l.bf16 %v4001_v42 }
 0x115   :  { %528 = vmax.xlane.f32.xlu1 %v3909_v43 }
 0x11a   :  { %v318_v46 = vpop.f32.mrf.mxu0 }
 0x11b   :  { %v3917_v47 = vadd.f32 %v3410_v45, %v318_v46 }
 0x11d   :  { %530 = vmax.xlane.f32.xlu2 %v3917_v47 }
 0x122   :  { %v320_v52 = vpop.f32.mrf.mxu0 }
 0x123   :  { %v3930_v53 = vadd.f32 %v3411_v49, %v320_v52  ;;  %v3270_v52 = vld [vmem:[%s4959_s0 + $0x50] sm:$0xff] }
 0x124   :  { %2870 = vmatmul.msk.bf16.gmra.mxu1 %vm235_vm0, %v3270_v52 }
 0x125   :  { %532 = vmax.xlane.f32.xlu2 %v3930_v53 }
 0x12a   :  { %v323_v58 = vpop.f32.mrf.mxu0 }
 0x12b   :  { %v3942_v59 = vadd.f32 %v3414_v56, %v323_v58 }
 0x12d   :  { %534 = vmax.xlane.f32.xlu0 %v3942_v59 }
 0x132   :  { %v325_v63 = vpop.f32.mrf.mxu0 }
 0x133   :  { %v3952_v0 = vadd.f32 %v3415_v61, %v325_v63  ;;  %v4029_v63 = vld [vmem:[#allocation5 + $0x8] sm:$0xff]  }
 0x134   :  { %v3394_v4 = vunpack.c.l.bf16 %v4029_v63 }
 0x135   :  { %536 = vmax.xlane.f32.xlu1 %v3952_v0 }
 0x136   :  { %v4041_v7 = vadd.f32 %v3394_v4, %v3876_v26 }
 0x13a   :  { %v328_v5 = vpop.f32.mrf.mxu0 }
 0x13b   :  { %v3964_v6 = vadd.f32 %v3418_v3, %v328_v5 }
 0x13d   :  { %538 = vmax.xlane.f32.xlu1 %v3964_v6 }
 0x142   :  { %v330_v32 = vpop.f32.mrf.mxu0 }
 0x143   :  { %v3996_v35 = vadd.f32 %v3419_v23, %v330_v32 }
 0x170   :  { %v523_v15 = vpop.xlane.xlu0 %522 }
 0x171   :  { %v580_v16 = vsub.f32 %v3889_v33, %v523_v15  ;;  %v3395_v15 = vunpack.c.h.bf16 %v4029_v63 }
 0x173   :  { %v618_v17 = vmul.f32 1.442695, %v580_v16  ;;  %v3318_v16 = vld [vmem:[#allocation2 + $0xcc] sm:$0xf0] }
 0x175   :  { %3546 = vpow2.f32 %v618_v17  ;;  %v3316_v17 = vld [vmem:[#allocation2 + $0xc4] sm:$0xf] }
 0x178   :  { %v525_v18 = vpop.xlane.xlu0 %524 }
 0x179   :  { %v581_v19 = vsub.f32 %v3895_v36, %v525_v18  ;;  %v2976_v18 = vld [vmem:[#allocation2 + $0xd0] sm:$0xf0] }
 0x17a   :  { %v2979_v32 = vor.u32 %v3316_v17, %v2976_v18  ;;  %v2944_v17 = vld [vmem:[#allocation2 + $0x90] sm:$0xf0] }
 0x17b   :  { %v3989_v21 = vpop.eup %3546  ;;  %v620_v22 = vmul.f32 1.442695, %v581_v19  ;;  %v2975_v19 = vor.u32 %v3318_v16, %v2974_v14  ;;  %v3310_v14 = vld [vmem:[#allocation2 + $0x8c] sm:$0xf0] }
 0x17c   :  { %682 = vadd.xlane.f32.xlu2 %v3989_v21 }
 0x17d   :  { %3548 = vpow2.f32 %v620_v22  ;;  %3523 = vmatpush.bf16.msra.mxu2 %v2975_v19  ;;  %1103 = vmatpush.bf16.msrb.mxu0 %v2975_v19  ;;  %v2926_v19 = vld [vmem:[#allocation2 + $0x60] sm:$0xf] }
 0x180   :  { %v527_v33 = vpop.xlane.xlu1 %526 }
 0x181   :  { %v582_v36 = vsub.f32 %v3903_v40, %v527_v33  ;;  %v4013_v40 = vadd.f32 %v3390_v48, %v3872_v24  ;;  %v4053_v33 = vadd.f32 %v3395_v15, %v3878_v27  ;;  %v3272_v27 = vld [vmem:[%s4959_s0 + $0x60] sm:$0xff]  ;;  %3524 = vmatpush.bf16.msra.mxu2 %v2959_v12  ;;  %1104 = vmatpush.bf16.msrb.mxu0 %v2959_v12 }
 0x182   :  { %v2895_v12 = vor.u32 %v3298_v11, %v2894_v10 }
 0x183   :  { %v3999_v39 = vpop.eup %3548  ;;  %v622_v46 = vmul.f32 1.442695, %v582_v36 }
 0x184   :  { %540 = vmax.xlane.f32.xlu2 %v3996_v35  ;;  %684 = vadd.xlane.f32.xlu0 %v3999_v39 }
 0x185   :  { %3550 = vpow2.f32 %v622_v46  ;;  %v4057_v46 = vld [vmem:[#allocation5 + $0x10] sm:$0xff]  }
 0x188   :  { %v529_v50 = vpop.xlane.xlu1 %528 }
 0x189   :  { %v583_v51 = vsub.f32 %v3909_v43, %v529_v50  ;;  %v3391_v43 = vunpack.c.h.bf16 %v4001_v42 }
 0x18b   :  { %v4015_v55 = vpop.eup %3550  ;;  %v624_v57 = vmul.f32 1.442695, %v583_v51  ;;  %v4025_v24 = vadd.f32 %v3391_v43, %v3874_v25 }
 0x18c   :  { %686 = vadd.xlane.f32.xlu0 %v4015_v55  ;;  %510 = vmax.xlane.f32.xlu2 %v4013_v40 }
 0x18d   :  { %3552 = vpow2.f32 %v624_v57 }
 0x190   :  { %v531_v58 = vpop.xlane.xlu2 %530 }
 0x191   :  { %v584_v60 = vsub.f32 %v3917_v47, %v531_v58  ;;  %v3271_v47 = vld [vmem:[%s4959_s0 + $0x58] sm:$0xff] }
 0x192   :  { %2871 = vmatmul.msk.bf16.gmra.mxu1 %vm235_vm0, %v3271_v47 }
 0x193   :  { %v4027_v62 = vpop.eup %3552  ;;  %v626_v2 = vmul.f32 1.442695, %v584_v60 }
 0x194   :  { %688 = vadd.xlane.f32.xlu1 %v4027_v62  ;;  %512 = vmax.xlane.f32.xlu0 %v4025_v24 }
 0x195   :  { %3554 = vpow2.f32 %v626_v2  ;;  %v3399_v2 = vunpack.c.h.bf16 %v4057_v46 }
 0x198   :  { %v533_v5 = vpop.xlane.xlu2 %532 }
 0x199   :  { %v585_v25 = vsub.f32 %v3930_v53, %v533_v5  ;;  %v2992_v53 = vld [vmem:[#allocation2 + $0xf0] sm:$0xf0] }
 0x19a   :  { %v2995_v26 = vor.u32 %v3320_v13, %v2992_v53  ;;  %v2960_v13 = vld [vmem:[#allocation2 + $0xb0] sm:$0xf0] }
 0x19b   :  { %v4043_v8 = vpop.eup %3554  ;;  %v628_v9 = vmul.f32 1.442695, %v585_v25 }
 0x19c   :  { %690 = vadd.xlane.f32.xlu1 %v4043_v8  ;;  %514 = vmax.xlane.f32.xlu0 %v4041_v7 }
 0x19d   :  { %3556 = vpow2.f32 %v628_v9  ;;  %3530 = vmatpush.bf16.msra.mxu3 %v2995_v26  ;;  %1151 = vmatpush.bf16.msrb.mxu1 %v2995_v26  ;;  %v3308_v26 = vld [vmem:[#allocation2 + $0x84] sm:$0xf] }
 0x19e   :  { %v2947_v18 = vor.u32 %v3308_v26, %v2944_v17  ;;  %v3292_v26 = vld [vmem:[#allocation2 + $0x4] sm:$0xf]  ;;  %v2880_v17 = vld [vmem:[#allocation2 + $0x10] sm:$0xf0] }
 0x1a0   :  { %v535_v20 = vpop.xlane.xlu0 %534 }
 0x1a1   :  { %v586_v22 = vsub.f32 %v3942_v59, %v535_v20  ;;  %3531 = vmatpush.bf16.msra.mxu3 %v2979_v32  ;;  %1152 = vmatpush.bf16.msrb.mxu1 %v2979_v32  ;;  %v3398_v59 = vunpack.c.l.bf16 %v4057_v46  ;;  %v3306_v20 = vld [vmem:[#allocation2 + $0x6c] sm:$0xf0]  ;;  %v2982_v46 = vld [vmem:[#allocation2 + $0xc8] sm:$0xf] }
 0x1a2   :  { %2872 = vmatmul.msk.bf16.gmra.mxu1 %vm235_vm0, %v3272_v27  ;;  %v2927_v32 = vor.u32 %v3306_v20, %v2926_v19  ;;  %v4090_v20 = vpop.f32.mrf.mxu1 }
 0x1a3   :  { %v4055_v36 = vpop.eup %3556  ;;  %v630_v50 = vmul.f32 1.442695, %v586_v22  ;;  %v4069_v57 = vadd.f32 %v3398_v59, %v3880_v28  ;;  %v4081_v28 = vadd.f32 %v3399_v2, %v3882_v29  ;;  %v2942_v29 = vld [vmem:[#allocation2 + $0x80] sm:$0xf]  ;;  %v3304_v22 = vld [vmem:[#allocation2 + $0x64] sm:$0xf] }
 0x1a4   :  { %516 = vmax.xlane.f32.xlu1 %v4053_v33  ;;  %692 = vadd.xlane.f32.xlu2 %v4055_v36  ;;  %v2943_v16 = vor.u32 %v3310_v14, %v2942_v29  ;;  %v2878_v29 = vld [vmem:[#allocation2] sm:$0xf]  ;;  %v3294_v14 = vld [vmem:[#allocation2 + $0xc] sm:$0xf0] }
 0x1a5   :  { %3558 = vpow2.f32 %v630_v50  ;;  %v2928_v50 = vld [vmem:[#allocation2 + $0x70] sm:$0xf0] }
 0x1a6   :  { %3525 = vmatpush.bf16.msra.mxu2 %v2943_v16  ;;  %1105 = vmatpush.bf16.msrb.mxu0 %v2943_v16  ;;  %v2931_v27 = vor.u32 %v3304_v22, %v2928_v50  ;;  %v2879_v16 = vor.u32 %v3294_v14, %v2878_v29 }
 0x1a8   :  { %v537_v51 = vpop.xlane.xlu1 %536 }
 0x1a9   :  { %v587_v52 = vsub.f32 %v3952_v0, %v537_v51  ;;  %v2910_v51 = vld [vmem:[#allocation2 + $0x40] sm:$0xf] }
 0x1aa   :  { %3526 = vmatpush.bf16.msra.mxu2 %v2927_v32  ;;  %1106 = vmatpush.bf16.msrb.mxu0 %v2927_v32 }
 0x1ab   :  { %v4071_v58 = vpop.eup %3558  ;;  %v632_v60 = vmul.f32 1.442695, %v587_v52  ;;  %v3302_v52 = vld [vmem:[#allocation2 + $0x4c] sm:$0xf0] }
 0x1ac   :  { %518 = vmax.xlane.f32.xlu1 %v4069_v57  ;;  %694 = vadd.xlane.f32.xlu2 %v4071_v58 }
 0x1ad   :  { %3560 = vpow2.f32 %v632_v60  ;;  %v3300_v60 = vld [vmem:[#allocation2 + $0x44] sm:$0xf] }
 0x1b0   :  { %v539_v47 = vpop.xlane.xlu1 %538 }
 0x1b1   :  { %v588_v0 = vsub.f32 %v3964_v6, %v539_v47  ;;  %v3312_v6 = vld [vmem:[#allocation2 + $0xa4] sm:$0xf]  ;;  %v2911_v47 = vor.u32 %v3302_v52, %v2910_v51 }
 0x1b2   :  { %v2963_v53 = vor.u32 %v3312_v6, %v2960_v13  ;;  %v3296_v6 = vld [vmem:[#allocation2 + $0x24] sm:$0xf]  ;;  %v2896_v13 = vld [vmem:[#allocation2 + $0x30] sm:$0xf0] }
 0x1b3   :  { %v4083_v5 = vpop.eup %3560  ;;  %v634_v25 = vmul.f32 1.442695, %v588_v0  ;;  %v2912_v0 = vld [vmem:[#allocation2 + $0x50] sm:$0xf0]  ;;  %3527 = vmatpush.bf16.msra.mxu2 %v2911_v47  ;;  %1107 = vmatpush.bf16.msrb.mxu0 %v2911_v47  ;;  %v4094_v47 = vpop.f32.mrf.mxu1 }
 0x1b4   :  { %696 = vadd.xlane.f32.xlu0 %v4083_v5  ;;  %520 = vmax.xlane.f32.xlu2 %v4081_v28 }
 0x1b5   :  { %3562 = vpow2.f32 %v634_v25  ;;  %3532 = vmatpush.bf16.msra.mxu3 %v2963_v53  ;;  %1153 = vmatpush.bf16.msrb.mxu1 %v2963_v53  ;;  %v2915_v25 = vor.u32 %v3300_v60, %v2912_v0  ;;  %v2899_v53 = vor.u32 %v3296_v6, %v2896_v13 }
 0x1b7   :  { %3528 = vmatpush.bf16.msra.mxu2 %v2895_v12  ;;  %1108 = vmatpush.bf16.msrb.mxu0 %v2895_v12 }
 0x1b9   :  { %3533 = vmatpush.bf16.msra.mxu3 %v2947_v18  ;;  %1154 = vmatpush.bf16.msrb.mxu1 %v2947_v18  ;;  %v2883_v18 = vor.u32 %v3292_v26, %v2880_v17  ;;  %v3273_v17 = vld [vmem:[%s4959_s0 + $0x68] sm:$0xff] }
 0x1ba   :  { %2873 = vmatmul.msk.bf16.gmra.mxu1 %vm235_vm0, %v3273_v17 }
 0x1bb   :  { %v4087_v9 = vpop.eup %3562  ;;  %3529 = vmatpush.bf16.msra.mxu2 %v2879_v16  ;;  %1109 = vmatpush.bf16.msrb.mxu0 %v2879_v16  ;;  %v4106_v16 = vpop.f32.mrf.mxu1 }
 0x1bc   :  { %698 = vadd.xlane.f32.xlu0 %v4087_v9 }
 0x1bd   :  { %3534 = vmatpush.bf16.msra.mxu3 %v2931_v27  ;;  %1155 = vmatpush.bf16.msrb.mxu1 %v2931_v27 }
 0x1c1   :  { %3535 = vmatpush.bf16.msra.mxu3 %v2915_v25  ;;  %1156 = vmatpush.bf16.msrb.mxu1 %v2915_v25 }
 0x1c5   :  { %3536 = vmatpush.bf16.msra.mxu3 %v2899_v53  ;;  %1157 = vmatpush.bf16.msrb.mxu1 %v2899_v53 }
 0x1c9   :  { %3537 = vmatpush.bf16.msra.mxu3 %v2883_v18  ;;  %1158 = vmatpush.bf16.msrb.mxu1 %v2883_v18 }
 0x1ef   :  { %v683_v19 = vpop.xlane.xlu2 %682 }
 0x1f0   :  { %3564 = vrcp.f32 %v683_v19 }
 0x1f6   :  { %v3565_v50 = vpop.eup %3564 }
 0x1f7   :  { %v541_v22 = vpop.xlane.xlu2 %540  ;;  %v685_v32 = vpop.xlane.xlu0 %684  ;;  %v772_v52 = vmul.f32 %v3565_v50, %v3989_v21 }
 0x1f8   :  { %v589_v27 = vsub.f32 %v3996_v35, %v541_v22  ;;  %3566 = vrcp.f32 %v685_v32 }
 0x1f9   :  { %v804_v0 = vpack.c.bf16 %v772_v52, %v772_v52 }
 0x1fa   :  { %v636_v51 = vmul.f32 1.442695, %v589_v27 }
 0x1fb   :  { %v916_v53 = vunpack.c.l.b16 %v804_v0 }
 0x1fc   :  { %3568 = vpow2.f32 %v636_v51 }
 0x1fe   :  { %v3567_v60 = vpop.eup %3566 }
 0x1ff   :  { %v773_v25 = vmul.f32 %v3567_v60, %v3999_v39  ;;  %v687_v10 = vpop.xlane.xlu0 %686  ;;  %v511_v11 = vpop.xlane.xlu2 %510 }
 0x200   :  { %v574_v6 = vsub.f32 %v4013_v40, %v511_v11  ;;  %3570 = vrcp.f32 %v687_v10  ;;  %v477_v10 = vpop.f32.mrf.mxu1 }
 0x201   :  { %v805_v12 = vpack.c.bf16 %v773_v25, %v773_v25 }
 0x202   :  { %v4098_v13 = vpop.eup %3568  ;;  %v606_v35 = vmul.f32 1.442695, %v574_v6 }
 0x203   :  { %v917_v29 = vunpack.c.l.b16 %v805_v12  ;;  %700 = vadd.xlane.f32.xlu1 %v4098_v13 }
 0x204   :  { %3572 = vpow2.f32 %v606_v35 }
 0x205   :  { %v4101_v21 = vpack.c.b16 %v917_v29, %v916_v53  ;;  %v3274_v53 = vld [vmem:[%s4959_s0 + $0x70] sm:$0xff] }
 0x206   :  { %v3571_v26 = vpop.eup %3570  ;;  %2874 = vmatmul.msk.bf16.gmra.mxu1 %vm235_vm0, %v3274_v53  ;;  %v4161_v53 = vadd.f32 %v3395_v15, %v477_v10  ;;  %v3323_v10 = vld [vmem:[#allocation2 + $0xf4] sm:$0xf0] }
 0x207   :  { %v689_v14 = vpop.xlane.xlu1 %688  ;;  %1125 = vmatmul.bf16.vlgmr.msra.gmra.mxu2 %v4101_v21  ;;  %1174 = vmatmul.bf16.vlgmr.msra.gmra.mxu3 %v4101_v21  ;;  %v513_v39 = vpop.xlane.xlu0 %512  ;;  %v774_v22 = vmul.f32 %v3571_v26, %v4015_v55 }
 0x208   :  { %3574 = vrcp.f32 %v689_v14  ;;  %v575_v40 = vsub.f32 %v4025_v24, %v513_v39  ;;  %v480_v26 = vpop.f32.mrf.mxu1 }
 0x209   :  { %v806_v50 = vpack.c.bf16 %v774_v22, %v774_v22  ;;  %v4177_v15 = vadd.f32 %v3398_v59, %v480_v26  ;;  %v3000_v26 = vld [vmem:[#allocation2 + $0xf8] sm:$0xf0] }
 0x20a   :  { %v4111_v18 = vpop.eup %3572  ;;  %v608_v19 = vmul.f32 1.442695, %v575_v40 }
 0x20b   :  { %670 = vadd.xlane.f32.xlu2 %v4111_v18  ;;  %v918_v11 = vunpack.c.l.b16 %v806_v50 }
 0x20c   :  { %3576 = vpow2.f32 %v608_v19 }
 0x20e   :  { %v3575_v32 = vpop.eup %3574 }
 0x20f   :  { %v775_v24 = vmul.f32 %v3575_v32, %v4027_v62  ;;  %v691_v27 = vpop.xlane.xlu1 %690  ;;  %v515_v51 = vpop.xlane.xlu0 %514 }
 0x210   :  { %v576_v52 = vsub.f32 %v4041_v7, %v515_v51  ;;  %3578 = vrcp.f32 %v691_v27 }
 0x211   :  { %v807_v60 = vpack.c.bf16 %v775_v24, %v775_v24 }
 0x212   :  { %v4118_v0 = vpop.eup %3576  ;;  %v610_v25 = vmul.f32 1.442695, %v576_v52 }
 0x213   :  { %v919_v6 = vunpack.c.l.b16 %v807_v60  ;;  %672 = vadd.xlane.f32.xlu0 %v4118_v0  ;;  %v482_v60 = vpop.f32.mrf.mxu1 }
 0x214   :  { %3580 = vpow2.f32 %v610_v25 }
 0x215   :  { %v4121_v55 = vpack.c.b16 %v919_v6, %v918_v11 }
 0x216   :  { %v3579_v7 = vpop.eup %3578 }
 0x217   :  { %1130 = vmatmul.bf16.gmra.mxu2 %v4121_v55  ;;  %1179 = vmatmul.bf16.gmra.mxu3 %v4121_v55  ;;  %v517_v62 = vpop.xlane.xlu1 %516  ;;  %v693_v12 = vpop.xlane.xlu2 %692  ;;  %v776_v39 = vmul.f32 %v3579_v7, %v4043_v8 }
 0x218   :  { %v577_v35 = vsub.f32 %v4053_v33, %v517_v62  ;;  %3582 = vrcp.f32 %v693_v12  ;;  %v3275_v62 = vld [vmem:[%s4959_s0 + $0x78] sm:$0xff] }
 0x219   :  { %v808_v17 = vpack.c.bf16 %v776_v39, %v776_v39  ;;  %2875 = vmatmul.msk.bf16.gmra.mxu1 %vm235_vm0, %v3275_v62  ;;  %v3309_v62 = vld [vmem:[#allocation2 + $0x8c] sm:$0xf] }
 0x21a   :  { %v4129_v29 = vpop.eup %3580  ;;  %v612_v14 = vmul.f32 1.442695, %v577_v35 }
 0x21b   :  { %674 = vadd.xlane.f32.xlu1 %v4129_v29  ;;  %v920_v8 = vunpack.c.l.b16 %v808_v17 }
 0x21c   :  { %3584 = vpow2.f32 %v612_v14  ;;  %v485_v14 = vpop.f32.mrf.mxu1 }
 0x21d   :  { %v4183_v42 = vadd.f32 %v3402_v31, %v485_v14  ;;  %v4199_v31 = vadd.f32 %v3399_v2, %v482_v60  ;;  %v3319_v2 = vld [vmem:[#allocation2 + $0xd4] sm:$0xf0]  ;;  %v3305_v14 = vld [vmem:[#allocation2 + $0x6c] sm:$0xf] }
 0x21e   :  { %v3583_v40 = vpop.eup %3582 }
 0x21f   :  { %v777_v33 = vmul.f32 %v3583_v40, %v4055_v36  ;;  %v519_v19 = vpop.xlane.xlu1 %518  ;;  %v695_v22 = vpop.xlane.xlu2 %694  ;;  %v4144_v36 = vadd.f32 %v3390_v48, %v4090_v20 }
 0x220   :  { %v578_v32 = vsub.f32 %v4069_v57, %v519_v19  ;;  %3586 = vrcp.f32 %v695_v22  ;;  %v3003_v19 = vor.u32 %v3321_v30, %v3000_v26  ;;  %v3317_v22 = vld [vmem:[#allocation2 + $0xcc] sm:$0xf]  ;;  %v2920_v30 = vld [vmem:[#allocation2 + $0x58] sm:$0xf0]  ;;  %v2902_v26 = vld [vmem:[#allocation2 + $0x28] sm:$0xf] }
 0x221   :  { %v809_v50 = vpack.c.bf16 %v777_v33, %v777_v33 }
 0x222   :  { %v4136_v24 = vpop.eup %3584  ;;  %v614_v27 = vmul.f32 1.442695, %v578_v32  ;;  %1249 = vmatpush.bf16.msrb.mxu3 %v3003_v19  ;;  %v2983_v32 = vor.u32 %v3319_v2, %v2982_v46  ;;  %v3299_v19 = vld [vmem:[#allocation2 + $0x34] sm:$0xf0]  ;;  %v3297_v46 = vld [vmem:[#allocation2 + $0x2c] sm:$0xf] }
 0x223   :  { %v921_v51 = vunpack.c.l.b16 %v809_v50  ;;  %676 = vadd.xlane.f32.xlu2 %v4136_v24  ;;  %v2984_v50 = vld [vmem:[#allocation2 + $0xd8] sm:$0xf0] }
 0x224   :  { %3588 = vpow2.f32 %v614_v27  ;;  %v2987_v27 = vor.u32 %v3317_v22, %v2984_v50  ;;  %v2903_v22 = vor.u32 %v3299_v19, %v2902_v26 }
 0x225   :  { %v4139_v52 = vpack.c.b16 %v921_v51, %v920_v8  ;;  %v3315_v8 = vld [vmem:[#allocation2 + $0xb4] sm:$0xf0]  ;;  %v3313_v51 = vld [vmem:[#allocation2 + $0xac] sm:$0xf] }
 0x226   :  { %v3587_v11 = vpop.eup %3586  ;;  %1250 = vmatpush.bf16.msrb.mxu3 %v2987_v27  ;;  %v2886_v27 = vld [vmem:[#allocation2 + $0x8] sm:$0xf] }
 0x227   :  { %v697_v25 = vpop.xlane.xlu0 %696  ;;  %1135 = vmatmul.bf16.gmra.mxu2 %v4139_v52  ;;  %1184 = vmatmul.bf16.gmra.mxu3 %v4139_v52  ;;  %v521_v57 = vpop.xlane.xlu2 %520  ;;  %v778_v48 = vmul.f32 %v3587_v11, %v4071_v58  ;;  %v4166_v58 = vadd.f32 %v3391_v43, %v4094_v47  ;;  %v4188_v43 = vadd.f32 %v3394_v4, %v4106_v16  ;;  %v2998_v16 = vld [vmem:[#allocation2 + $0xe8] sm:$0xf] }
 0x228   :  { %3590 = vrcp.f32 %v697_v25  ;;  %v579_v6 = vsub.f32 %v4081_v28, %v521_v57  ;;  %v487_v47 = vpop.f32.mrf.mxu1  ;;  %v2968_v25 = vld [vmem:[#allocation2 + $0xb8] sm:$0xf0]  ;;  %v2950_v11 = vld [vmem:[#allocation2 + $0x88] sm:$0xf] }
 0x229   :  { %v810_v35 = vpack.c.bf16 %v778_v48, %v778_v48  ;;  %v4195_v59 = vadd.f32 %v3403_v34, %v487_v47  ;;  %v2999_v34 = vor.u32 %v3323_v10, %v2998_v16  ;;  %v2971_v57 = vor.u32 %v3313_v51, %v2968_v25  ;;  %v2952_v48 = vld [vmem:[#allocation2 + $0x98] sm:$0xf0]  ;;  %v2918_v47 = vld [vmem:[#allocation2 + $0x48] sm:$0xf]  ;;  %v3301_v10 = vld [vmem:[#allocation2 + $0x4c] sm:$0xf] }
 0x22a   :  { %v4152_v12 = vpop.eup %3588  ;;  %v616_v7 = vmul.f32 1.442695, %v579_v6  ;;  %v3311_v6 = vld [vmem:[#allocation2 + $0x94] sm:$0xf0] }
 0x22b   :  { %678 = vadd.xlane.f32.xlu0 %v4152_v12  ;;  %542 = vmax.xlane.f32.xlu2 %v4144_v36  ;;  %v922_v17 = vunpack.c.l.b16 %v810_v35  ;;  %v2934_v35 = vld [vmem:[#allocation2 + $0x68] sm:$0xf] }
 0x22c   :  { %3592 = vpow2.f32 %v616_v7  ;;  %1200 = vmatpush.bf16.msrb.mxu2 %v2999_v34  ;;  %1251 = vmatpush.bf16.msrb.mxu3 %v2971_v57  ;;  %v2951_v7 = vor.u32 %v3311_v6, %v2950_v11  ;;  %v2923_v34 = vor.u32 %v3301_v10, %v2920_v30 }
 0x22e   :  { %v3591_v20 = vpop.eup %3590 }
 0x22f   :  { %v779_v28 = vmul.f32 %v3591_v20, %v4083_v5  ;;  %v2955_v20 = vor.u32 %v3309_v62, %v2952_v48  ;;  %v699_v2 = vpop.xlane.xlu0 %698 }
 0x230   :  { %v490_v63 = vpop.f32.mrf.mxu1  ;;  %1201 = vmatpush.bf16.msrb.mxu2 %v2983_v32  ;;  %v2904_v32 = vld [vmem:[#allocation2 + $0x38] sm:$0xf0]  ;;  %3594 = vrcp.f32 %v699_v2 }
 0x231   :  { %v811_v39 = vpack.c.bf16 %v779_v28, %v779_v28  ;;  %v4205_v4 = vadd.f32 %v3406_v38, %v490_v63  ;;  %v2966_v38 = vld [vmem:[#allocation2 + $0xa8] sm:$0xf]  ;;  %1252 = vmatpush.bf16.msrb.mxu3 %v2955_v20  ;;  %v3307_v28 = vld [vmem:[#allocation2 + $0x74] sm:$0xf0]  ;;  %v2907_v50 = vor.u32 %v3297_v46, %v2904_v32 }
 0x232   :  { %v4168_v40 = vpop.eup %3592  ;;  %v2967_v60 = vor.u32 %v3315_v8, %v2966_v38  ;;  %v3303_v63 = vld [vmem:[#allocation2 + $0x54] sm:$0xf0]  ;;  %v3293_v8 = vld [vmem:[#allocation2 + $0xc] sm:$0xf] }
 0x233   :  { %v923_v33 = vunpack.c.l.b16 %v811_v39  ;;  %544 = vmax.xlane.f32.xlu0 %v4166_v58  ;;  %548 = vmax.xlane.f32.xlu2 %v4161_v53  ;;  %v2935_v39 = vor.u32 %v3307_v28, %v2934_v35  ;;  %v2919_v16 = vor.u32 %v3303_v63, %v2918_v47  ;;  %v3295_v38 = vld [vmem:[#allocation2 + $0x14] sm:$0xf0] }
 0x234   :  { %680 = vadd.xlane.f32.xlu1 %v4168_v40  ;;  %1202 = vmatpush.bf16.msrb.mxu2 %v2967_v60  ;;  %v2887_v51 = vor.u32 %v3295_v38, %v2886_v27  ;;  %v2888_v60 = vld [vmem:[#allocation2 + $0x18] sm:$0xf0] }
 0x235   :  { %v4173_v5 = vpack.c.b16 %v923_v33, %v922_v17  ;;  %v2936_v17 = vld [vmem:[#allocation2 + $0x78] sm:$0xf0]  ;;  %v2891_v25 = vor.u32 %v3293_v8, %v2888_v60 }
 0x236   :  { %v2939_v33 = vor.u32 %v3305_v14, %v2936_v17  ;;  %v3595_v11 = vpop.eup %3594 }
 0x237   :  { %1140 = vmatmul.bf16.gmra.mxu2 %v4173_v5  ;;  %1189 = vmatmul.bf16.gmra.mxu3 %v4173_v5  ;;  %v780_v6 = vmul.f32 %v3595_v11, %v4087_v9 }
 0x238   :  { %1203 = vmatpush.bf16.msrb.mxu2 %v2951_v7  ;;  %1253 = vmatpush.bf16.msrb.mxu3 %v2939_v33  ;;  %v492_v30 = vpop.f32.mrf.mxu1 }
 0x239   :  { %v812_v7 = vpack.c.bf16 %v780_v6, %v780_v6 }
 0x23b   :  { %550 = vmax.xlane.f32.xlu0 %v4177_v15  ;;  %554 = vmax.xlane.f32.xlu2 %v4183_v42  ;;  %v924_v28 = vunpack.c.l.b16 %v812_v7 }
 0x23c   :  { %546 = vmax.xlane.f32.xlu1 %v4188_v43  ;;  %1204 = vmatpush.bf16.msrb.mxu2 %v2935_v39 }
 0x23d   :  { %1254 = vmatpush.bf16.msrb.mxu3 %v2923_v34 }
 0x240   :  { %1205 = vmatpush.bf16.msrb.mxu2 %v2919_v16 }
 0x241   :  { %1255 = vmatpush.bf16.msrb.mxu3 %v2907_v50 }
 0x243   :  { %556 = vmax.xlane.f32.xlu0 %v4195_v59 }
 0x244   :  { %552 = vmax.xlane.f32.xlu1 %v4199_v31  ;;  %1206 = vmatpush.bf16.msrb.mxu2 %v2903_v22  ;;  %v495_v22 = vpop.f32.mrf.mxu1 }
 0x245   :  { %1256 = vmatpush.bf16.msrb.mxu3 %v2891_v25 }
 0x248   :  { %1207 = vmatpush.bf16.msrb.mxu2 %v2887_v51 }
 0x24b   :  { %558 = vmax.xlane.f32.xlu0 %v4205_v4 }
 0x24c   :  { %v497_v6 = vpop.f32.mrf.mxu1 }
 0x276   :  { %v701_v57 = vpop.xlane.xlu1 %700 }
 0x277   :  { %3596 = vrcp.f32 %v701_v57 }
 0x27d   :  { %v3597_v62 = vpop.eup %3596 }
 0x27e   :  { %v781_v48 = vmul.f32 %v3597_v62, %v4098_v13  ;;  %v671_v20 = vpop.xlane.xlu2 %670 }
 0x27f   :  { %3598 = vrcp.f32 %v671_v20 }
 0x280   :  { %v813_v35 = vpack.c.bf16 %v781_v48, %v781_v48 }
 0x282   :  { %v925_v14 = vunpack.c.l.b16 %v813_v35 }
 0x284   :  { %v4210_v39 = vpack.c.b16 %v925_v14, %v924_v28 }
 0x285   :  { %v3599_v33 = vpop.eup %3598 }
 0x286   :  { %v673_v17 = vpop.xlane.xlu0 %672  ;;  %1145 = vmatmul.bf16.gmra.mxu2 %v4210_v39  ;;  %1194 = vmatmul.bf16.gmra.mxu3 %v4210_v39  ;;  %v766_v9 = vmul.f32 %v3599_v33, %v4111_v18 }
 0x287   :  { %3600 = vrcp.f32 %v673_v17 }
 0x288   :  { %v798_v63 = vpack.c.bf16 %v766_v9, %v766_v9 }
 0x28a   :  { %v910_v34 = vunpack.c.l.b16 %v798_v63 }
 0x28d   :  { %v3601_v47 = vpop.eup %3600 }
 0x28e   :  { %v767_v13 = vmul.f32 %v3601_v47, %v4118_v0  ;;  %v675_v16 = vpop.xlane.xlu1 %674 }
 0x28f   :  { %3602 = vrcp.f32 %v675_v16  ;;  %v4230_v16 = vadd.f32 %v3407_v41, %v492_v30  ;;  %v4241_v41 = vadd.f32 %v3410_v45, %v495_v22 }
 0x290   :  { %v799_v10 = vpack.c.bf16 %v767_v13, %v767_v13 }
 0x292   :  { %v911_v26 = vunpack.c.l.b16 %v799_v10 }
 0x294   :  { %v926_v19 = vpack.c.b16 %v911_v26, %v910_v34 }
 0x295   :  { %v3603_v2 = vpop.eup %3602 }
 0x296   :  { %1110 = vmatmul.bf16.vlgmr.msrb.gmra.mxu0 %v926_v19  ;;  %1159 = vmatmul.bf16.vlgmr.msrb.gmra.mxu1 %v926_v19  ;;  %v677_v46 = vpop.xlane.xlu2 %676  ;;  %v768_v18 = vmul.f32 %v3603_v2, %v4129_v29 }
 0x297   :  { %1208 = vmatmul.bf16.vlgmr.msrb.gmra.mxu2 %v926_v19  ;;  %1257 = vmatmul.bf16.vlgmr.msrb.gmra.mxu3 %v926_v19  ;;  %3604 = vrcp.f32 %v677_v46 }
 0x298   :  { %v800_v50 = vpack.c.bf16 %v768_v18, %v768_v18 }
 0x29a   :  { %v912_v25 = vunpack.c.l.b16 %v800_v50 }
 0x29d   :  { %v3605_v32 = vpop.eup %3604 }
 0x29e   :  { %v769_v0 = vmul.f32 %v3605_v32, %v4136_v24  ;;  %v679_v27 = vpop.xlane.xlu0 %678  ;;  %v543_v38 = vpop.xlane.xlu2 %542 }
 0x29f   :  { %v590_v8 = vsub.f32 %v4144_v36, %v543_v38  ;;  %3606 = vrcp.f32 %v679_v27  ;;  %v4258_v27 = vadd.f32 %v3411_v49, %v497_v6  ;;  %v3126_v49 = vld [vmem:[#allocation2 + $0x1e8] sm:$0xf]  ;;  %v3128_v6 = vld [vmem:[#allocation2 + $0x1f8] sm:$0xf0] }
 0x2a0   :  { %v801_v51 = vpack.c.bf16 %v769_v0, %v769_v0 }
 0x2a1   :  { %v638_v60 = vmul.f32 1.442695, %v590_v8 }
 0x2a2   :  { %v913_v57 = vunpack.c.l.b16 %v801_v51 }
 0x2a3   :  { %3608 = vpow2.f32 %v638_v60  ;;  %v3355_v60 = vld [vmem:[#allocation2 + $0x1f4] sm:$0xf0] }
 0x2a4   :  { %v927_v11 = vpack.c.b16 %v913_v57, %v912_v25  ;;  %v3127_v57 = vor.u32 %v3355_v60, %v3126_v49  ;;  %v3342_v49 = vld [vmem:[#allocation2 + $0x18c] sm:$0xf0]  ;;  %v3340_v60 = vld [vmem:[#allocation2 + $0x184] sm:$0xf] }
 0x2a5   :  { %v3607_v36 = vpop.eup %3606 }
 0x2a6   :  { %v545_v62 = vpop.xlane.xlu0 %544  ;;  %1115 = vmatmul.bf16.gmra.mxu0 %v927_v11  ;;  %1164 = vmatmul.bf16.gmra.mxu1 %v927_v11  ;;  %v549_v29 = vpop.xlane.xlu2 %548  ;;  %v770_v14 = vmul.f32 %v3607_v36, %v4152_v12 }
 0x2a7   :  { %v591_v7 = vsub.f32 %v4166_v58, %v545_v62  ;;  %v681_v48 = vpop.xlane.xlu1 %680  ;;  %1213 = vmatmul.bf16.gmra.mxu2 %v927_v11  ;;  %1262 = vmatmul.bf16.gmra.mxu3 %v927_v11  ;;  %v593_v24 = vsub.f32 %v4161_v53, %v549_v29  ;;  %v500_v58 = vpop.f32.mrf.mxu1  ;;  %v3110_v62 = vld [vmem:[#allocation2 + $0x1c8] sm:$0xf] }
 0x2a8   :  { %3610 = vrcp.f32 %v681_v48  ;;  %v802_v9 = vpack.c.bf16 %v770_v14, %v770_v14  ;;  %1604 = vmatpush.bf16.msra.mxu2 %v3127_v57  ;;  %v4295_v48 = vpop.f32.mrf.mxu2  ;;  %v3072_v57 = vld [vmem:[#allocation2 + $0x190] sm:$0xf0] }
 0x2a9   :  { %v4221_v20 = vpop.eup %3608  ;;  %v640_v35 = vmul.f32 1.442695, %v591_v7  ;;  %v644_v28 = vmul.f32 1.442695, %v593_v24  ;;  %v3351_v7 = vld [vmem:[#allocation2 + $0x1d4] sm:$0xf0] }
 0x2aa   :  { %702 = vadd.xlane.f32.xlu1 %v4221_v20  ;;  %v3349_v24 = vld [vmem:[#allocation2 + $0x1cc] sm:$0xf] }
 0x2ab   :  { %3612 = vpow2.f32 %v640_v35  ;;  %v4299_v35 = vpop.f32.mrf.mxu3 }
 0x2ac   :  { %3614 = vpow2.f32 %v644_v28 }
 0x2ae   :  { %v3611_v17 = vpop.eup %3610  ;;  %v551_v33 = vpop.xlane.xlu0 %550 }
 0x2af   :  { %v771_v47 = vmul.f32 %v3611_v17, %v4168_v40  ;;  %v594_v53 = vsub.f32 %v4177_v15, %v551_v33  ;;  %v547_v63 = vpop.xlane.xlu1 %546  ;;  %v914_v40 = vunpack.c.l.b16 %v802_v9  ;;  %v502_v46 = vpop.f32.mrf.mxu1  ;;  %v3118_v17 = vld [vmem:[#allocation2 + $0x1e0] sm:$0xf]  ;;  %v3354_v33 = vld [vmem:[#allocation2 + $0x1ec] sm:$0xf0]  ;;  %v3094_v9 = vld [vmem:[#allocation2 + $0x1a8] sm:$0xf] }
 0x2b0   :  { %v592_v13 = vsub.f32 %v4188_v43, %v547_v63  ;;  %v555_v18 = vpop.xlane.xlu2 %554  ;;  %v4254_v0 = vadd.f32 %v3415_v61, %v502_v46  ;;  %v4268_v61 = vadd.f32 %v3414_v56, %v500_v58  ;;  %v4301_v28 = vpop.f32.mrf.mxu2  ;;  %v3352_v58 = vld [vmem:[#allocation2 + $0x1e4] sm:$0xf]  ;;  %v3120_v63 = vld [vmem:[#allocation2 + $0x1f0] sm:$0xf0] }
 0x2b1   :  { %v4232_v10 = vpop.eup %3612  ;;  %v803_v12 = vpack.c.bf16 %v771_v47, %v771_v47  ;;  %v646_v34 = vmul.f32 1.442695, %v594_v53  ;;  %v596_v45 = vsub.f32 %v4183_v42, %v555_v18  ;;  %v3347_v47 = vld [vmem:[#allocation2 + $0x1b4] sm:$0xf0]  ;;  %v3119_v53 = vor.u32 %v3354_v33, %v3118_v17  ;;  %v3056_v17 = vld [vmem:[#allocation2 + $0x170] sm:$0xf0] }
 0x2b2   :  { %v4234_v26 = vpop.eup %3614  ;;  %v642_v19 = vmul.f32 1.442695, %v592_v13  ;;  %704 = vadd.xlane.f32.xlu2 %v4232_v10  ;;  %560 = vmax.xlane.f32.xlu1 %v4230_v16  ;;  %v3095_v13 = vor.u32 %v3347_v47, %v3094_v9  ;;  %v3062_v33 = vld [vmem:[#allocation2 + $0x168] sm:$0xf] }
 0x2b3   :  { %v915_v15 = vunpack.c.l.b16 %v803_v12  ;;  %3616 = vpow2.f32 %v646_v34  ;;  %708 = vadd.xlane.f32.xlu0 %v4234_v26  ;;  %v4303_v14 = vpop.f32.mrf.mxu3  ;;  %v3123_v12 = vor.u32 %v3352_v58, %v3120_v63  ;;  %v3096_v34 = vld [vmem:[#allocation2 + $0x1b8] sm:$0xf0]  ;;  %1506 = vmatpush.bf16.msra.mxu0 %v3119_v53  ;;  %v3339_v58 = vld [vmem:[#allocation2 + $0x174] sm:$0xf0]  ;;  %v3337_v53 = vld [vmem:[#allocation2 + $0x16c] sm:$0xf] }
 0x2b4   :  { %3618 = vpow2.f32 %v642_v19  ;;  %v3063_v47 = vor.u32 %v3339_v58, %v3062_v33  ;;  %v3064_v63 = vld [vmem:[#allocation2 + $0x178] sm:$0xf0] }
 0x2b5   :  { %v928_v37 = vpack.c.b16 %v915_v15, %v914_v40  ;;  %v3102_v40 = vld [vmem:[#allocation2 + $0x1c0] sm:$0xf]  ;;  %v3350_v15 = vld [vmem:[#allocation2 + $0x1cc] sm:$0xf0]  ;;  %1555 = vmatpush.bf16.msra.mxu1 %v3123_v12  ;;  %v3067_v12 = vor.u32 %v3337_v53, %v3064_v63 }
 0x2b6   :  { %v557_v22 = vpop.xlane.xlu0 %556 }
 0x2b7   :  { %v553_v43 = vpop.xlane.xlu1 %552  ;;  %1120 = vmatmul.bf16.gmra.mxu0 %v928_v37  ;;  %1169 = vmatmul.bf16.gmra.mxu1 %v928_v37  ;;  %v505_v8 = vpop.f32.mrf.mxu1  ;;  %v597_v42 = vsub.f32 %v4195_v59, %v557_v22  ;;  %v3344_v22 = vld [vmem:[#allocation2 + $0x1a4] sm:$0xf] }
 0x2b8   :  { %v595_v30 = vsub.f32 %v4199_v31, %v553_v43  ;;  %1218 = vmatmul.bf16.gmra.mxu2 %v928_v37  ;;  %1267 = vmatmul.bf16.gmra.mxu3 %v928_v37  ;;  %v650_v31 = vmul.f32 1.442695, %v596_v45  ;;  %v4274_v44 = vadd.f32 %v3418_v3, %v505_v8  ;;  %v3348_v37 = vld [vmem:[#allocation2 + $0x1c4] sm:$0xf]  ;;  %v3103_v43 = vor.u32 %v3350_v15, %v3102_v40  ;;  %v4307_v18 = vpop.f32.mrf.mxu2  ;;  %v3346_v45 = vld [vmem:[#allocation2 + $0x1ac] sm:$0xf0] }
 0x2b9   :  { %v4244_v2 = vpop.eup %3616  ;;  %v652_v51 = vmul.f32 1.442695, %v597_v42  ;;  %v3088_v8 = vld [vmem:[#allocation2 + $0x1b0] sm:$0xf0] }
 0x2ba   :  { %v4246_v32 = vpop.eup %3618  ;;  %v648_v50 = vmul.f32 1.442695, %v595_v30  ;;  %562 = vmax.xlane.f32.xlu1 %v4241_v41  ;;  %v3104_v30 = vld [vmem:[#allocation2 + $0x1d0] sm:$0xf0]  ;;  %1507 = vmatpush.bf16.msra.mxu0 %v3103_v43  ;;  %v3091_v42 = vor.u32 %v3344_v22, %v3088_v8  ;;  %v3335_v43 = vld [vmem:[#allocation2 + $0x154] sm:$0xf0] }
 0x2bb   :  { %706 = vadd.xlane.f32.xlu2 %v4246_v32  ;;  %710 = vadd.xlane.f32.xlu0 %v4244_v2  ;;  %v3107_v46 = vor.u32 %v3348_v37, %v3104_v30  ;;  %v3040_v15 = vld [vmem:[#allocation2 + $0x150] sm:$0xf0]  ;;  %v3046_v37 = vld [vmem:[#allocation2 + $0x148] sm:$0xf]  ;;  %v3328_v8 = vld [vmem:[#allocation2 + $0x124] sm:$0xf] }
 0x2bc   :  { %3620 = vpow2.f32 %v648_v50  ;;  %v3086_v50 = vld [vmem:[#allocation2 + $0x1a0] sm:$0xf] }
 0x2bd   :  { %3622 = vpow2.f32 %v650_v31  ;;  %v4309_v31 = vpop.f32.mrf.mxu3  ;;  %1556 = vmatpush.bf16.msra.mxu1 %v3107_v46  ;;  %v3047_v46 = vor.u32 %v3335_v43, %v3046_v37 }
 0x2be   :  { %v559_v25 = vpop.xlane.xlu0 %558  ;;  %3624 = vpow2.f32 %v652_v51  ;;  %v3070_v51 = vld [vmem:[#allocation2 + $0x180] sm:$0xf] }
 0x2bf   :  { %v598_v54 = vsub.f32 %v4205_v4, %v559_v25  ;;  %v507_v56 = vpop.f32.mrf.mxu1  ;;  %v3353_v4 = vld [vmem:[#allocation2 + $0x1ec] sm:$0xf]  ;;  %v3071_v25 = vor.u32 %v3342_v49, %v3070_v51  ;;  %v3024_v51 = vld [vmem:[#allocation2 + $0x130] sm:$0xf0]  ;;  %v3030_v49 = vld [vmem:[#allocation2 + $0x128] sm:$0xf] }
 0x2c0   :  { %v4284_v3 = vadd.f32 %v3419_v23, %v507_v56  ;;  %v3131_v29 = vor.u32 %v3353_v4, %v3128_v6  ;;  %v3111_v23 = vor.u32 %v3351_v7, %v3110_v62  ;;  %v3343_v56 = vld [vmem:[#allocation2 + $0x194] sm:$0xf0]  ;;  %v3341_v6 = vld [vmem:[#allocation2 + $0x18c] sm:$0xf]  ;;  %v3080_v62 = vld [vmem:[#allocation2 + $0x198] sm:$0xf0] }
 0x2c1   :  { %1557 = vmatpush.bf16.msra.mxu1 %v3091_v42  ;;  %v3054_v7 = vld [vmem:[#allocation2 + $0x160] sm:$0xf] }
 0x2c2   :  { %v4260_v38 = vpop.eup %3620  ;;  %1653 = vmatpush.bf16.msra.mxu3 %v3131_v29  ;;  %1605 = vmatpush.bf16.msra.mxu2 %v3111_v23  ;;  %v3083_v29 = vor.u32 %v3341_v6, %v3080_v62  ;;  %v3338_v23 = vld [vmem:[#allocation2 + $0x16c] sm:$0xf0]  ;;  %v3006_v6 = vld [vmem:[#allocation2 + $0x100] sm:$0xf] }
 0x2c3   :  { %564 = vmax.xlane.f32.xlu2 %v4258_v27  ;;  %712 = vadd.xlane.f32.xlu1 %v4260_v38  ;;  %v4276_v59 = vpop.eup %3622  ;;  %v3326_v62 = vld [vmem:[#allocation2 + $0x10c] sm:$0xf0] }
 0x2c4   :  { %568 = vmax.xlane.f32.xlu0 %v4254_v0  ;;  %v4286_v11 = vpop.eup %3624 }
 0x2c6   :  { %1606 = vmatpush.bf16.msra.mxu2 %v3095_v13  ;;  %v4313_v13 = vpop.f32.mrf.mxu3 }
 0x2c8   :  { %1223 = vmatmul.bf16.gmra.mxu2 %v4101_v21  ;;  %1272 = vmatmul.bf16.gmra.mxu3 %v4101_v21  ;;  %v654_v21 = vmul.f32 1.442695, %v598_v54  ;;  %v3078_v54 = vld [vmem:[#allocation2 + $0x188] sm:$0xf] }
 0x2c9   :  { %v3079_v4 = vor.u32 %v3343_v56, %v3078_v54  ;;  %v3329_v54 = vld [vmem:[#allocation2 + $0x12c] sm:$0xf]  ;;  %v3032_v56 = vld [vmem:[#allocation2 + $0x138] sm:$0xf0] }
 0x2ca   :  { %3626 = vpow2.f32 %v654_v21  ;;  %v3075_v21 = vor.u32 %v3340_v60, %v3072_v57  ;;  %v3331_v60 = vld [vmem:[#allocation2 + $0x134] sm:$0xf0] }
 0x2cb   :  { %566 = vmax.xlane.f32.xlu2 %v4268_v61  ;;  %714 = vadd.xlane.f32.xlu1 %v4276_v59  ;;  %v3031_v57 = vor.u32 %v3331_v60, %v3030_v49 }
 0x2cc   :  { %570 = vmax.xlane.f32.xlu0 %v4274_v44  ;;  %1607 = vmatpush.bf16.msra.mxu2 %v3079_v4  ;;  %v3035_v4 = vor.u32 %v3329_v54, %v3032_v56 }
 0x2cd   :  { %1558 = vmatpush.bf16.msra.mxu1 %v3075_v21 }
 0x2d0   :  { %v4292_v1 = vpop.eup %3626  ;;  %1608 = vmatpush.bf16.msra.mxu2 %v3063_v47  ;;  %v3016_v47 = vld [vmem:[#allocation2 + $0x118] sm:$0xf0] }
 0x2d3   :  { %716 = vadd.xlane.f32.xlu2 %v4286_v11  ;;  %572 = vmax.xlane.f32.xlu1 %v4284_v3 }
 0x2d4   :  { %1609 = vmatpush.bf16.msra.mxu2 %v3047_v46 }
 0x2d8   :  { %1228 = vmatmul.bf16.gmra.mxu2 %v4121_v55  ;;  %1277 = vmatmul.bf16.gmra.mxu3 %v4121_v55  ;;  %v3112_v55 = vld [vmem:[#allocation2 + $0x1d8] sm:$0xf0] }
 0x2d9   :  { %v3115_v36 = vor.u32 %v3349_v24, %v3112_v55  ;;  %v3336_v24 = vld [vmem:[#allocation2 + $0x164] sm:$0xf]  ;;  %v4311_v55 = vpop.f32.mrf.mxu2  ;;  %1610 = vmatpush.bf16.msra.mxu2 %v3031_v57 }
 0x2da   :  { %v3059_v9 = vor.u32 %v3336_v24, %v3056_v17  ;;  %v3008_v24 = vld [vmem:[#allocation2 + $0x110] sm:$0xf0]  ;;  %v3327_v17 = vld [vmem:[#allocation2 + $0x114] sm:$0xf0] }
 0x2db   :  { %718 = vadd.xlane.f32.xlu2 %v4292_v1  ;;  %1654 = vmatpush.bf16.msra.mxu3 %v3115_v36  ;;  %v3055_v36 = vor.u32 %v3338_v23, %v3054_v7  ;;  %v4319_v7 = vpop.f32.mrf.mxu3  ;;  %v3007_v23 = vor.u32 %v3326_v62, %v3006_v6 }
 0x2dc   :  { %1559 = vmatpush.bf16.msra.mxu1 %v3059_v9  ;;  %v3325_v9 = vld [vmem:[#allocation2 + $0x10c] sm:$0xf] }
 0x2dd   :  { %v3019_v53 = vor.u32 %v3325_v9, %v3016_v47 }
 0x2e1   :  { %v4317_v21 = vpop.f32.mrf.mxu2 }
 0x2e8   :  { %1233 = vmatmul.bf16.gmra.mxu2 %v4139_v52  ;;  %1282 = vmatmul.bf16.gmra.mxu3 %v4139_v52  ;;  %v3345_v52 = vld [vmem:[#allocation2 + $0x1ac] sm:$0xf] }
 0x2e9   :  { %v3099_v19 = vor.u32 %v3345_v52, %v3096_v34  ;;  %v3038_v52 = vld [vmem:[#allocation2 + $0x140] sm:$0xf]  ;;  %v3334_v34 = vld [vmem:[#allocation2 + $0x14c] sm:$0xf0]  ;;  %v4321_v63 = vpop.f32.mrf.mxu2 }
 0x2ea   :  { %v3039_v40 = vor.u32 %v3334_v34, %v3038_v52 }
 0x2eb   :  { %1655 = vmatpush.bf16.msra.mxu3 %v3099_v19  ;;  %v3332_v19 = vld [vmem:[#allocation2 + $0x144] sm:$0xf] }
 0x2ec   :  { %v3043_v30 = vor.u32 %v3332_v19, %v3040_v15 }
 0x2ee   :  { %1560 = vmatpush.bf16.msra.mxu1 %v3043_v30 }
 0x2ef   :  { %1656 = vmatpush.bf16.msra.mxu3 %v3083_v29  ;;  %v3324_v29 = vld [vmem:[#allocation2 + $0x104] sm:$0xf] }
 0x2f0   :  { %v3011_v33 = vor.u32 %v3324_v29, %v3008_v24 }
 0x2f1   :  { %v4325_v34 = vpop.f32.mrf.mxu2 }
 0x2f2   :  { %4968 = vst [vmem:[#allocation12_spill] sm:$0xff] %v4325_v34 }
 0x2f3   :  { %1657 = vmatpush.bf16.msra.mxu3 %v3067_v12  ;;  %v4323_v12 = vpop.f32.mrf.mxu3 }
 0x2f4   :  { %4967 = vst [vmem:[#allocation11_spill] sm:$0xff] %v4323_v12 }
 0x2f8   :  { %1238 = vmatmul.bf16.gmra.mxu2 %v4173_v5  ;;  %1287 = vmatmul.bf16.gmra.mxu3 %v4173_v5  ;;  %v3087_v5 = vor.u32 %v3346_v45, %v3086_v50  ;;  %v3333_v50 = vld [vmem:[#allocation2 + $0x14c] sm:$0xf]  ;;  %v3048_v45 = vld [vmem:[#allocation2 + $0x158] sm:$0xf0] }
 0x2f9   :  { %v3051_v22 = vor.u32 %v3333_v50, %v3048_v45 }
 0x2fa   :  { %1508 = vmatpush.bf16.msra.mxu0 %v3087_v5  ;;  %v3330_v5 = vld [vmem:[#allocation2 + $0x12c] sm:$0xf0] }
 0x2fb   :  { %1658 = vmatpush.bf16.msra.mxu3 %v3051_v22  ;;  %v4327_v37 = vpop.f32.mrf.mxu3 }
 0x2fc   :  { %4969 = vst [vmem:[#allocation13_spill] sm:$0xff] %v4327_v37 }
 0x2fe   :  { %1509 = vmatpush.bf16.msra.mxu0 %v3071_v25  ;;  %v3027_v25 = vor.u32 %v3328_v8, %v3024_v51 }
 0x2ff   :  { %1659 = vmatpush.bf16.msra.mxu3 %v3035_v4 }
 0x300   :  { %1561 = vmatpush.bf16.msra.mxu1 %v3027_v25 }
 0x302   :  { %1510 = vmatpush.bf16.msra.mxu0 %v3055_v36  ;;  %v3014_v36 = vld [vmem:[#allocation2 + $0x108] sm:$0xf] }
 0x303   :  { %v3015_v58 = vor.u32 %v3327_v17, %v3014_v36  ;;  %1660 = vmatpush.bf16.msra.mxu3 %v3019_v53  ;;  %v4337_v25 = vpop.f32.mrf.mxu3 }
 0x304   :  { %1562 = vmatpush.bf16.msra.mxu1 %v3011_v33  ;;  %4971 = vst [vmem:[#allocation15_spill] sm:$0xff] %v4337_v25 }
 0x305   :  { %1611 = vmatpush.bf16.msra.mxu2 %v3015_v58 }
 0x306   :  { %1511 = vmatpush.bf16.msra.mxu0 %v3039_v40 }
 0x308   :  { %1243 = vmatmul.bf16.gmra.mxu2 %v4210_v39  ;;  %1292 = vmatmul.bf16.gmra.mxu3 %v4210_v39  ;;  %v3022_v39 = vld [vmem:[#allocation2 + $0x120] sm:$0xf] }
 0x309   :  { %v3023_v42 = vor.u32 %v3330_v5, %v3022_v39 }
 0x30b   :  { %1512 = vmatpush.bf16.msra.mxu0 %v3023_v42  ;;  %v4345_v36 = vpop.f32.mrf.mxu3 }
 0x30c   :  { %4973 = vst [vmem:[#allocation17_spill] sm:$0xff] %v4345_v36 }
 0x30f   :  { %1513 = vmatpush.bf16.msra.mxu0 %v3007_v23 }
 0x31d   :  { %v703_v52 = vpop.xlane.xlu1 %702 }
 0x31e   :  { %3628 = vrcp.f32 %v703_v52 }
 0x324   :  { %v3629_v15 = vpop.eup %3628 }
 0x325   :  { %v561_v19 = vpop.xlane.xlu1 %560  ;;  %v705_v40 = vpop.xlane.xlu2 %704  ;;  %v782_v50 = vmul.f32 %v3629_v15, %v4221_v20 }
 0x326   :  { %v599_v43 = vsub.f32 %v4230_v16, %v561_v19  ;;  %v709_v30 = vpop.xlane.xlu0 %708  ;;  %3630 = vrcp.f32 %v705_v40  ;;  %v4335_v16 = vpop.f32.mrf.mxu2 }
 0x327   :  { %v814_v22 = vpack.c.bf16 %v782_v50, %v782_v50  ;;  %4970 = vst [vmem:[#allocation14_spill] sm:$0xff] %v4335_v16  ;;  %v4357_v50 = vpop.f32.mrf.mxu3 }
 0x328   :  { %v656_v46 = vmul.f32 1.442695, %v599_v43  ;;  %4975 = vst [vmem:[#allocation19_spill] sm:$0xff] %v4357_v50 }
 0x329   :  { %v1314_v20 = vunpack.c.l.b16 %v814_v22 }
 0x32a   :  { %3632 = vpow2.f32 %v656_v46 }
 0x32b   :  { %3634 = vrcp.f32 %v709_v30 }
 0x32c   :  { %v3631_v45 = vpop.eup %3630 }
 0x32d   :  { %v783_v39 = vmul.f32 %v3631_v45, %v4232_v10  ;;  %v563_v5 = vpop.xlane.xlu1 %562 }
 0x32e   :  { %v600_v8 = vsub.f32 %v4241_v41, %v563_v5  ;;  %v711_v42 = vpop.xlane.xlu0 %710  ;;  %v707_v51 = vpop.xlane.xlu2 %706 }
 0x32f   :  { %v815_v49 = vpack.c.bf16 %v783_v39, %v783_v39  ;;  %3636 = vrcp.f32 %v707_v51  ;;  %v4343_v24 = vpop.f32.mrf.mxu2 }
 0x330   :  { %v4333_v60 = vpop.eup %3632  ;;  %v658_v57 = vmul.f32 1.442695, %v600_v8  ;;  %4972 = vst [vmem:[#allocation16_spill] sm:$0xff] %v4343_v24 }
 0x331   :  { %v1315_v54 = vunpack.c.l.b16 %v815_v49  ;;  %720 = vadd.xlane.f32.xlu0 %v4333_v60  ;;  %v3635_v56 = vpop.eup %3634 }
 0x332   :  { %3638 = vpow2.f32 %v658_v57  ;;  %v785_v58 = vmul.f32 %v3635_v56, %v4234_v26 }
 0x333   :  { %v1330_v10 = vpack.c.b16 %v1315_v54, %v1314_v20 }
 0x335   :  { %1514 = vmatmul.bf16.vlgmr.msra.gmra.mxu0 %v1330_v10  ;;  %1563 = vmatmul.bf16.vlgmr.msra.gmra.mxu1 %v1330_v10  ;;  %v3637_v41 = vpop.eup %3636 }
 0x336   :  { %v713_v4 = vpop.xlane.xlu1 %712  ;;  %1612 = vmatmul.bf16.vlgmr.msra.gmra.mxu2 %v1330_v10  ;;  %1661 = vmatmul.bf16.vlgmr.msra.gmra.mxu3 %v1330_v10  ;;  %v565_v6 = vpop.xlane.xlu2 %564  ;;  %v784_v62 = vmul.f32 %v3637_v41, %v4246_v32  ;;  %v817_v32 = vpack.c.bf16 %v785_v58, %v785_v58  ;;  %v3379_v58 = vld [vmem:[%s4964_s5 + $0xb8] sm:$0xff] }
 0x337   :  { %v569_v29 = vpop.xlane.xlu0 %568  ;;  %v601_v33 = vsub.f32 %v4258_v27, %v565_v6  ;;  %v4355_v46 = vpop.f32.mrf.mxu2  ;;  %2470 = vmatpush.bf16.msrb.mxu2 %v3379_v58  ;;  %v3368_v58 = vld [vmem:[%s4964_s5 + $0x60] sm:$0xff] }
 0x338   :  { %v4341_v23 = vpop.eup %3638  ;;  %v603_v17 = vsub.f32 %v4254_v0, %v569_v29  ;;  %v816_v53 = vpack.c.bf16 %v784_v62, %v784_v62  ;;  %v1317_v27 = vunpack.c.l.b16 %v817_v32  ;;  %4974 = vst [vmem:[#allocation18_spill] sm:$0xff] %v4355_v46  ;;  %v4373_v41 = vpop.f32.mrf.mxu3  ;;  %v3371_v32 = vld [vmem:[%s4964_s5 + $0x78] sm:$0xff] }
 0x339   :  { %722 = vadd.xlane.f32.xlu1 %v4341_v23  ;;  %v660_v47 = vmul.f32 1.442695, %v601_v33  ;;  %2381 = vmatpush.bf16.msrb.mxu1 %v3371_v32 }
 0x33a   :  { %v664_v9 = vmul.f32 1.442695, %v603_v17  ;;  %v1316_v40 = vunpack.c.l.b16 %v816_v53 }
 0x33c   :  { %3640 = vpow2.f32 %v664_v9  ;;  %v1331_v39 = vpack.c.b16 %v1317_v27, %v1316_v40  ;;  %v3363_v9 = vld [vmem:[%s4964_s5 + $0x38] sm:$0xff] }
 0x33d   :  { %3642 = vpow2.f32 %v660_v47  ;;  %v3387_v47 = vld [vmem:[%s4964_s5 + $0xf8] sm:$0xff]  ;;  %2292 = vmatpush.bf16.msrb.mxu0 %v3363_v9 }
 0x33e   :  { %3644 = vrcp.f32 %v713_v4  ;;  %v715_v52 = vpop.xlane.xlu1 %714  ;;  %v567_v19 = vpop.xlane.xlu2 %566  ;;  %2559 = vmatpush.bf16.msrb.mxu3 %v3387_v47 }
 0x33f   :  { %v571_v15 = vpop.xlane.xlu0 %570  ;;  %v602_v43 = vsub.f32 %v4268_v61, %v567_v19  ;;  %3646 = vrcp.f32 %v711_v42  ;;  %v4371_v56 = vpop.f32.mrf.mxu2 }
 0x340   :  { %v604_v0 = vsub.f32 %v4274_v44, %v571_v15  ;;  %v4381_v33 = vpop.f32.mrf.mxu3 }
 0x341   :  { %v662_v26 = vmul.f32 1.442695, %v602_v43 }
 0x342   :  { %v4353_v30 = vpop.eup %3640  ;;  %v666_v45 = vmul.f32 1.442695, %v604_v0 }
 0x343   :  { %v4359_v22 = vpop.eup %3642  ;;  %3648 = vpow2.f32 %v662_v26  ;;  %728 = vadd.xlane.f32.xlu1 %v4353_v30 }
 0x344   :  { %v3645_v5 = vpop.eup %3644  ;;  %3650 = vpow2.f32 %v666_v45  ;;  %724 = vadd.xlane.f32.xlu2 %v4359_v22  ;;  %v3386_v45 = vld [vmem:[%s4964_s5 + $0xf0] sm:$0xff] }
 0x345   :  { %1519 = vmatmul.bf16.gmra.mxu0 %v1331_v39  ;;  %1568 = vmatmul.bf16.gmra.mxu1 %v1331_v39  ;;  %v3647_v61 = vpop.eup %3646  ;;  %v787_v8 = vmul.f32 %v3645_v5, %v4260_v38 }
 0x346   :  { %v573_v44 = vpop.xlane.xlu1 %572  ;;  %1617 = vmatmul.bf16.gmra.mxu2 %v1331_v39  ;;  %1666 = vmatmul.bf16.gmra.mxu3 %v1331_v39  ;;  %v786_v49 = vmul.f32 %v3647_v61, %v4244_v2  ;;  %v717_v10 = vpop.xlane.xlu2 %716  ;;  %v3370_v39 = vld [vmem:[%s4964_s5 + $0x70] sm:$0xff] }
 0x347   :  { %v605_v42 = vsub.f32 %v4284_v3, %v573_v44  ;;  %v819_v54 = vpack.c.bf16 %v787_v8, %v787_v8  ;;  %v4379_v17 = vpop.f32.mrf.mxu2  ;;  %2560 = vmatpush.bf16.msrb.mxu3 %v3386_v45  ;;  %2382 = vmatpush.bf16.msrb.mxu1 %v3370_v39  ;;  %v4477_v39 = vpop.f32.mrf.mxu0 }
 0x348   :  { %v818_v38 = vpack.c.bf16 %v786_v49, %v786_v49  ;;  %v4399_v0 = vpop.f32.mrf.mxu3  ;;  %v3361_v49 = vld [vmem:[%s4964_s5 + $0x28] sm:$0xff] }
 0x349   :  { %v4365_v51 = vpop.eup %3648  ;;  %v668_v57 = vmul.f32 1.442695, %v605_v42  ;;  %v1319_v3 = vunpack.c.l.b16 %v819_v54  ;;  %v3377_v42 = vld [vmem:[%s4964_s5 + $0xa8] sm:$0xff] }
 0x34a   :  { %v4368_v20 = vpop.eup %3650  ;;  %726 = vadd.xlane.f32.xlu0 %v4365_v51  ;;  %v1318_v2 = vunpack.c.l.b16 %v818_v38  ;;  %v3369_v54 = vld [vmem:[%s4964_s5 + $0x68] sm:$0xff] }
 0x34b   :  { %3652 = vpow2.f32 %v668_v57  ;;  %v3385_v57 = vld [vmem:[%s4964_s5 + $0xe8] sm:$0xff]  ;;  %2383 = vmatpush.bf16.msrb.mxu1 %v3369_v54  ;;  %v3374_v54 = vld [vmem:[%s4964_s5 + $0x90] sm:$0xff] }
 0x34c   :  { %730 = vadd.xlane.f32.xlu2 %v4368_v20  ;;  %3654 = vrcp.f32 %v717_v10  ;;  %v1332_v6 = vpack.c.b16 %v1319_v3, %v1318_v2  ;;  %v3376_v10 = vld [vmem:[%s4964_s5 + $0xa0] sm:$0xff]  ;;  %2561 = vmatpush.bf16.msrb.mxu3 %v3385_v57 }
 0x34d   :  { %3656 = vrcp.f32 %v715_v52 }
 0x34e   :  { %v719_v32 = vpop.xlane.xlu2 %718 }
 0x34f   :  { %v4397_v43 = vpop.f32.mrf.mxu2  ;;  %2384 = vmatpush.bf16.msrb.mxu1 %v3368_v58  ;;  %3658 = vrcp.f32 %v719_v32 }
 0x350   :  { %v4415_v61 = vpop.f32.mrf.mxu3 }
 0x351   :  { %v4376_v4 = vpop.eup %3652 }
 0x352   :  { %732 = vadd.xlane.f32.xlu0 %v4376_v4  ;;  %v3655_v62 = vpop.eup %3654 }
 0x353   :  { %v3657_v29 = vpop.eup %3656  ;;  %v789_v53 = vmul.f32 %v3655_v62, %v4286_v11  ;;  %v3378_v11 = vld [vmem:[%s4964_s5 + $0xb0] sm:$0xff]  ;;  %v3360_v62 = vld [vmem:[%s4964_s5 + $0x20] sm:$0xff] }
 0x354   :  { %v788_v52 = vmul.f32 %v3657_v29, %v4276_v59  ;;  %v3362_v59 = vld [vmem:[%s4964_s5 + $0x30] sm:$0xff]  ;;  %2471 = vmatpush.bf16.msrb.mxu2 %v3378_v11  ;;  %v3384_v29 = vld [vmem:[%s4964_s5 + $0xe0] sm:$0xff] }
 0x355   :  { %1524 = vmatmul.bf16.gmra.mxu0 %v1332_v6  ;;  %1573 = vmatmul.bf16.gmra.mxu1 %v1332_v6  ;;  %v821_v19 = vpack.c.bf16 %v789_v53, %v789_v53  ;;  %v3375_v53 = vld [vmem:[%s4964_s5 + $0x98] sm:$0xff]  ;;  %v3659_v11 = vpop.eup %3658 }
 0x356   :  { %1622 = vmatmul.bf16.gmra.mxu2 %v1332_v6  ;;  %1671 = vmatmul.bf16.gmra.mxu3 %v1332_v6  ;;  %v820_v40 = vpack.c.bf16 %v788_v52, %v788_v52 }
 0x357   :  { %v1321_v15 = vunpack.c.l.b16 %v821_v19  ;;  %2293 = vmatpush.bf16.msrb.mxu0 %v3362_v59  ;;  %v4413_v5 = vpop.f32.mrf.mxu2  ;;  %2562 = vmatpush.bf16.msrb.mxu3 %v3384_v29 }
 0x358   :  { %v1320_v27 = vunpack.c.l.b16 %v820_v40  ;;  %v4419_v8 = vpop.f32.mrf.mxu3  ;;  %2472 = vmatpush.bf16.msrb.mxu2 %v3377_v42  ;;  %v3359_v40 = vld [vmem:[%s4964_s5 + $0x18] sm:$0xff]  ;;  %v790_v42 = vmul.f32 %v3659_v11, %v4292_v1  ;;  %v3358_v1 = vld [vmem:[%s4964_s5 + $0x10] sm:$0xff] }
 0x359   :  { %v3366_v11 = vld [vmem:[%s4964_s5 + $0x50] sm:$0xff] }
 0x35a   :  { %v1333_v26 = vpack.c.b16 %v1321_v15, %v1320_v27  ;;  %v3383_v15 = vld [vmem:[%s4964_s5 + $0xd8] sm:$0xff] }
 0x35b   :  { %2294 = vmatpush.bf16.msrb.mxu0 %v3361_v49  ;;  %v3367_v27 = vld [vmem:[%s4964_s5 + $0x58] sm:$0xff]  ;;  %2563 = vmatpush.bf16.msrb.mxu3 %v3383_v15  ;;  %v4480_v49 = vpop.f32.mrf.mxu1 }
 0x35c   :  { %2473 = vmatpush.bf16.msrb.mxu2 %v3376_v10  ;;  %2385 = vmatpush.bf16.msrb.mxu1 %v3367_v27  ;;  %v822_v10 = vpack.c.bf16 %v790_v42, %v790_v42  ;;  %v3382_v27 = vld [vmem:[%s4964_s5 + $0xd0] sm:$0xff] }
 0x35f   :  { %v4417_v44 = vpop.f32.mrf.mxu2  ;;  %2295 = vmatpush.bf16.msrb.mxu0 %v3360_v62  ;;  %2564 = vmatpush.bf16.msrb.mxu3 %v3382_v27  ;;  %v3365_v27 = vld [vmem:[%s4964_s5 + $0x48] sm:$0xff] }
 0x360   :  { %v4438_v3 = vpop.f32.mrf.mxu3  ;;  %2474 = vmatpush.bf16.msrb.mxu2 %v3375_v53  ;;  %v1322_v53 = vunpack.c.l.b16 %v822_v10  ;;  %2386 = vmatpush.bf16.msrb.mxu1 %v3366_v11  ;;  %v3373_v10 = vld [vmem:[%s4964_s5 + $0x88] sm:$0xff] }
 0x363   :  { %2296 = vmatpush.bf16.msrb.mxu0 %v3359_v40  ;;  %v4501_v42 = vpop.f32.mrf.mxu1 }
 0x364   :  { %2475 = vmatpush.bf16.msrb.mxu2 %v3374_v54  ;;  %2387 = vmatpush.bf16.msrb.mxu1 %v3365_v27 }
 0x365   :  { %1529 = vmatmul.bf16.gmra.mxu0 %v1333_v26  ;;  %1578 = vmatmul.bf16.gmra.mxu1 %v1333_v26 }
 0x366   :  { %1627 = vmatmul.bf16.gmra.mxu2 %v1333_v26  ;;  %1676 = vmatmul.bf16.gmra.mxu3 %v1333_v26 }
 0x367   :  { %v4436_v38 = vpop.f32.mrf.mxu2  ;;  %2297 = vmatpush.bf16.msrb.mxu0 %v3358_v1 }
 0x368   :  { %v4442_v6 = vpop.f32.mrf.mxu3  ;;  %2476 = vmatpush.bf16.msrb.mxu2 %v3373_v10 }
 0x36f   :  { %v4440_v2 = vpop.f32.mrf.mxu2 }
 0x370   :  { %v4455_v47 = vpop.f32.mrf.mxu3 }
 0x377   :  { %v4453_v9 = vpop.f32.mrf.mxu2 }
 0x378   :  { %v4462_v19 = vpop.f32.mrf.mxu3 }
 0x37f   :  { %v4460_v52 = vpop.f32.mrf.mxu2 }
 0x380   :  { %v4475_v45 = vpop.f32.mrf.mxu3 }
 0x387   :  { %v4473_v59 = vpop.f32.mrf.mxu2 }
 0x388   :  { %v4488_v40 = vpop.f32.mrf.mxu3 }
 0x389   :  { %4977 = vst [vmem:[#allocation21_spill] sm:$0xff] %v4488_v40 }
 0x38f   :  { %v4486_v32 = vpop.f32.mrf.mxu2 }
 0x390   :  { %4976 = vst [vmem:[#allocation20_spill] sm:$0xff] %v4486_v32 }
 0x3a4   :  { %v721_v26 = vpop.xlane.xlu0 %720 }
 0x3a5   :  { %3660 = vrcp.f32 %v721_v26  ;;  %v4496_v26 = vpop.f32.mrf.mxu0 }
 0x3ab   :  { %v3661_v57 = vpop.eup %3660 }
 0x3ac   :  { %v791_v62 = vmul.f32 %v3661_v57, %v4333_v60  ;;  %v723_v58 = vpop.xlane.xlu1 %722 }
 0x3ad   :  { %3662 = vrcp.f32 %v723_v58  ;;  %v4512_v58 = vpop.f32.mrf.mxu2  ;;  %v4517_v1 = vpop.f32.mrf.mxu0 }
 0x3ae   :  { %v823_v29 = vpack.c.bf16 %v791_v62, %v791_v62  ;;  %v3357_v62 = vld [vmem:[%s4964_s5 + $0x8] sm:$0xff]  ;;  %4978 = vst [vmem:[#allocation22_spill] sm:$0xff] %v4512_v58 }
 0x3af   :  { %2298 = vmatpush.bf16.msrb.mxu0 %v3357_v62 }
 0x3b0   :  { %v1323_v15 = vunpack.c.l.b16 %v823_v29  ;;  %v3381_v29 = vld [vmem:[%s4964_s5 + $0xc8] sm:$0xff] }
 0x3b1   :  { %2565 = vmatpush.bf16.msrb.mxu3 %v3381_v29 }
 0x3b2   :  { %v1334_v60 = vpack.c.b16 %v1323_v15, %v1322_v53  ;;  %v4514_v53 = vpop.f32.mrf.mxu3 }
 0x3b3   :  { %v3663_v54 = vpop.eup %3662  ;;  %4979 = vst [vmem:[#allocation23_spill] sm:$0xff] %v4514_v53 }
 0x3b4   :  { %1534 = vmatmul.bf16.gmra.mxu0 %v1334_v60  ;;  %1583 = vmatmul.bf16.gmra.mxu1 %v1334_v60  ;;  %v792_v15 = vmul.f32 %v3663_v54, %v4341_v23 }
 0x3b5   :  { %1632 = vmatmul.bf16.gmra.mxu2 %v1334_v60  ;;  %1681 = vmatmul.bf16.gmra.mxu3 %v1334_v60  ;;  %v4522_v60 = vpop.f32.mrf.mxu1  ;;  %v4525_v62 = vpop.f32.mrf.mxu2 }
 0x3b6   :  { %v824_v36 = vpack.c.bf16 %v792_v15, %v792_v15  ;;  %v729_v24 = vpop.xlane.xlu1 %728  ;;  %4980 = vst [vmem:[#allocation24_spill] sm:$0xff] %v4525_v62  ;;  %v4529_v34 = vpop.f32.mrf.mxu0 }
 0x3b7   :  { %v725_v57 = vpop.xlane.xlu2 %724 }
 0x3b8   :  { %3664 = vrcp.f32 %v725_v57  ;;  %v1324_v23 = vunpack.c.l.b16 %v824_v36  ;;  %v3356_v36 = vld [vmem:[%s4964_s5] sm:$0xff] }
 0x3b9   :  { %2299 = vmatpush.bf16.msrb.mxu0 %v3356_v36 }
 0x3ba   :  { %v4527_v29 = vpop.f32.mrf.mxu3 }
 0x3bb   :  { %4981 = vst [vmem:[#allocation25_spill] sm:$0xff] %v4527_v29 }
 0x3bd   :  { %v727_v11 = vpop.xlane.xlu0 %726  ;;  %v4531_v25 = vpop.f32.mrf.mxu1 }
 0x3be   :  { %v3665_v57 = vpop.eup %3664  ;;  %3666 = vrcp.f32 %v727_v11 }
 0x3bf   :  { %v793_v50 = vmul.f32 %v3665_v57, %v4359_v22  ;;  %3668 = vrcp.f32 %v729_v24  ;;  %v3372_v24 = vld [vmem:[%s4964_s5 + $0x80] sm:$0xff]  ;;  %v731_v29 = vpop.xlane.xlu2 %730 }
 0x3c0   :  { %2477 = vmatpush.bf16.msrb.mxu2 %v3372_v24 }
 0x3c1   :  { %v825_v10 = vpack.c.bf16 %v793_v50, %v793_v50  ;;  %v3380_v50 = vld [vmem:[%s4964_s5 + $0xc0] sm:$0xff] }
 0x3c2   :  { %2566 = vmatpush.bf16.msrb.mxu3 %v3380_v50 }
 0x3c3   :  { %v1325_v54 = vunpack.c.l.b16 %v825_v10  ;;  %v4547_v10 = vpop.f32.mrf.mxu2 }
 0x3c4   :  { %v3667_v37 = vpop.eup %3666  ;;  %4982 = vst [vmem:[#allocation26_spill] sm:$0xff] %v4547_v10 }
 0x3c5   :  { %v1335_v46 = vpack.c.b16 %v1325_v54, %v1324_v23  ;;  %v3669_v15 = vpop.eup %3668  ;;  %v794_v22 = vmul.f32 %v3667_v37, %v4365_v51  ;;  %v733_v57 = vpop.xlane.xlu0 %732 }
 0x3c6   :  { %v795_v27 = vmul.f32 %v3669_v15, %v4353_v30  ;;  %v4549_v23 = vpop.f32.mrf.mxu3  ;;  %3670 = vrcp.f32 %v733_v57  ;;  %v4551_v37 = vpop.f32.mrf.mxu0 }
 0x3c7   :  { %1539 = vmatmul.bf16.gmra.mxu0 %v1335_v46  ;;  %1588 = vmatmul.bf16.gmra.mxu1 %v1335_v46  ;;  %v826_v11 = vpack.c.bf16 %v794_v22, %v794_v22  ;;  %4983 = vst [vmem:[#allocation27_spill] sm:$0xff] %v4549_v23  ;;  %v4553_v51 = vpop.f32.mrf.mxu1  ;;  %3672 = vrcp.f32 %v731_v29 }
 0x3c8   :  { %1637 = vmatmul.bf16.gmra.mxu2 %v1335_v46  ;;  %1686 = vmatmul.bf16.gmra.mxu3 %v1335_v46  ;;  %v3364_v46 = vld [vmem:[%s4964_s5 + $0x40] sm:$0xff]  ;;  %v827_v54 = vpack.c.bf16 %v795_v27, %v795_v27 }
 0x3c9   :  { %2388 = vmatpush.bf16.msrb.mxu1 %v3364_v46  ;;  %v1326_v30 = vunpack.c.l.b16 %v826_v11 }
 0x3ca   :  { %v1327_v15 = vunpack.c.l.b16 %v827_v54 }
 0x3cb   :  { %v4555_v22 = vpop.f32.mrf.mxu2 }
 0x3cc   :  { %v1336_v24 = vpack.c.b16 %v1327_v15, %v1326_v30  ;;  %v3671_v36 = vpop.eup %3670  ;;  %4984 = vst [vmem:[#allocation28_spill] sm:$0xff] %v4555_v22 }
 0x3cd   :  { %v3673_v50 = vpop.eup %3672  ;;  %v797_v27 = vmul.f32 %v3671_v36, %v4376_v4  ;;  %v1702_v4 = vld [vmem:[%s4963_s4] sm:$0xf] }
 0x3ce   :  { %v4557_v62 = vpop.f32.mrf.mxu3  ;;  %v4560_v46 = vpop.f32.mrf.mxu0  ;;  %v796_v29 = vmul.f32 %v3673_v50, %v4368_v20  ;;  %v4580_v50 = vperm.slane %v1702_v4, 0 }
 0x3cf   :  { %4985 = vst [vmem:[#allocation29_spill] sm:$0xff] %v4557_v62  ;;  %v4562_v57 = vpop.f32.mrf.mxu1  ;;  %v829_v11 = vpack.c.bf16 %v797_v27, %v797_v27  ;;  %v4582_v27 = vperm.slane %v1702_v4, 1 }
 0x3d0   :  { %v828_v54 = vpack.c.bf16 %v796_v29, %v796_v29  ;;  %v4584_v29 = vperm.slane %v1702_v4, 2 }
 0x3d1   :  { %v1329_v30 = vunpack.c.l.b16 %v829_v11  ;;  %v4586_v11 = vperm.slane %v1702_v4, 3  ;;  %v1712_v4 = vadd.f32 %v4580_v50, %v4477_v39 }
 0x3d3   :  { %v4565_v15 = vpop.f32.mrf.mxu2 }
 0x3d4   :  { %4986 = vst [vmem:[#allocation30_spill] sm:$0xff] %v4565_v15 }
 0x3d6   :  { %v4567_v23 = vpop.f32.mrf.mxu3  ;;  %v4569_v22 = vpop.f32.mrf.mxu0 }
 0x3d7   :  { %1544 = vmatmul.bf16.gmra.mxu0 %v1336_v24  ;;  %1593 = vmatmul.bf16.gmra.mxu1 %v1336_v24  ;;  %4987 = vst [vmem:[#allocation31_spill] sm:$0xff] %v4567_v23  ;;  %v4571_v62 = vpop.f32.mrf.mxu1 }
 0x3d8   :  { %1642 = vmatmul.bf16.gmra.mxu2 %v1336_v24  ;;  %1691 = vmatmul.bf16.gmra.mxu3 %v1336_v24  ;;  %4988 = vst [vmem:[#allocation32_spill] sm:$0xff] %v4569_v22  ;;  %v1328_v24 = vunpack.c.l.b16 %v828_v54  ;;  %v1716_v54 = vadd.f32 %v4580_v50, %v4496_v26  ;;  %v1714_v26 = vadd.f32 %v4584_v29, %v4371_v56 }
 0x3d9   :  { %4989 = vst [vmem:[#allocation33_spill] sm:$0xff] %v4571_v62  ;;  %v1713_v62 = vadd.f32 %v4582_v27, %v4480_v49 }
 0x3da   :  { %v1337_v10 = vpack.c.b16 %v1329_v30, %v1328_v24  ;;  %v1717_v30 = vadd.f32 %v4582_v27, %v4501_v42  ;;  %v1715_v42 = vadd.f32 %v4586_v11, %v4373_v41  ;;  %v1844_v22 = vmax.f32 %v1716_v54, 0.0 }
 0x3db   :  { %v4576_v20 = vpop.f32.mrf.mxu2  ;;  %v1841_v15 = vmax.f32 %v1713_v62, 0.0  ;;  %v1842_v16 = vmax.f32 %v1714_v26, 0.0  ;;  %v1724_v41 = vadd.f32 %v4580_v50, %v4529_v34  ;;  %v1725_v62 = vadd.f32 %v4582_v27, %v4531_v25 }
 0x3dc   :  { %4990 = vst [vmem:[#allocation34_spill] sm:$0xff] %v4576_v20  ;;  %v1719_v20 = vadd.f32 %v4586_v11, %v4381_v33  ;;  %v1843_v33 = vmax.f32 %v1715_v42, 0.0  ;;  %v1722_v34 = vadd.f32 %v4584_v29, %v4397_v43  ;;  %v1723_v25 = vadd.f32 %v4586_v11, %v4399_v0 }
 0x3de   :  { %v4578_v36 = vpop.f32.mrf.mxu3  ;;  %v4592_v24 = vpop.f32.mrf.mxu0  ;;  %v1847_v23 = vmax.f32 %v1719_v20, 0.0 }
 0x3df   :  { %4991 = vst [vmem:[#allocation35_spill] sm:$0xff] %v4578_v36  ;;  %v1718_v36 = vadd.f32 %v4584_v29, %v4379_v17  ;;  %v1840_v17 = vmax.f32 %v1712_v4, 0.0 }
 0x3e0   :  { %4992 = vst [vmem:[#allocation36_spill] sm:$0xff] %v4592_v24  ;;  %v1971_v58 = vpack.c.bf16 %v1847_v23, %v1843_v33 }
 0x3e1   :  { %v1846_v24 = vmax.f32 %v1718_v36, 0.0  ;;  %v1968_v32 = vpack.c.bf16 %v1844_v22, %v1840_v17  ;;  %v1726_v22 = vadd.f32 %v4584_v29, %v4413_v5  ;;  %v1852_v5 = vmax.f32 %v1724_v41, 0.0 }
 0x3e2   :  { %v1733_v41 = vadd.f32 %v4582_v27, %v4562_v57 }
 0x3e3   :  { %v4608_v40 = vpop.f32.mrf.mxu2  ;;  %v1970_v53 = vpack.c.bf16 %v1846_v24, %v1842_v16  ;;  %v1727_v16 = vadd.f32 %v4586_v11, %v4415_v61  ;;  %v1854_v36 = vmax.f32 %v1726_v22, 0.0  ;;  %v1735_v22 = vadd.f32 %v4586_v11, %v4438_v3 }
 0x3e4   :  { %v1861_v57 = vmax.f32 %v1733_v41, 0.0  ;;  %v1736_v41 = vadd.f32 %v4580_v50, %v4295_v48 }
 0x3e5   :  { %v1855_v54 = vmax.f32 %v1727_v16, 0.0  ;;  %v1728_v16 = vadd.f32 %v4580_v50, %v4551_v37 }
 0x3e6   :  { %v4610_v39 = vpop.f32.mrf.mxu3  ;;  %v4612_v56 = vpop.f32.mrf.mxu0 }
 0x3e7   :  { %1549 = vmatmul.bf16.gmra.mxu0 %v1337_v10  ;;  %1598 = vmatmul.bf16.gmra.mxu1 %v1337_v10  ;;  %v1856_v3 = vmax.f32 %v1728_v16, 0.0 }
 0x3e8   :  { %1647 = vmatmul.bf16.gmra.mxu2 %v1337_v10  ;;  %1696 = vmatmul.bf16.gmra.mxu3 %v1337_v10  ;;  %v4594_v10 = vpop.f32.mrf.mxu1 }
 0x3e9   :  { %4993 = vst [vmem:[#allocation37_spill] sm:$0xff] %v4594_v10  ;;  %v1845_v10 = vmax.f32 %v1717_v30, 0.0 }
 0x3eb   :  { %v1969_v49 = vpack.c.bf16 %v1845_v10, %v1841_v15  ;;  %v4624_v23 = vpop.f32.mrf.mxu2  ;;  %v1851_v10 = vmax.f32 %v1723_v25, 0.0 }
 0x3ed   :  { %v1975_v42 = vpack.c.bf16 %v1855_v54, %v1851_v10 }
 0x3ee   :  { %v4626_v15 = vpop.f32.mrf.mxu3  ;;  %v4636_v20 = vpop.f32.mrf.mxu0 }
 0x3f0   :  { %v4614_v12 = vpop.f32.mrf.mxu1 }
 0x3f3   :  { %v4640_v43 = vpop.f32.mrf.mxu2 }
 0x3f6   :  { %v4642_v0 = vpop.f32.mrf.mxu3  ;;  %v4644_v17 = vpop.f32.mrf.mxu0 }
 0x3f7   :  { %2300 = vmatmul.bf16.vlgmr.msrb.gmra.mxu0 %v1968_v32  ;;  %2389 = vmatmul.bf16.vlgmr.msrb.gmra.mxu1 %v1969_v49  ;;  %v1720_v32 = vadd.f32 %v4580_v50, %v4517_v1  ;;  %v1850_v1 = vmax.f32 %v1722_v34, 0.0  ;;  %v1732_v49 = vadd.f32 %v4580_v50, %v4560_v46  ;;  %v1731_v46 = vadd.f32 %v4586_v11, %v4419_v8 }
 0x3f8   :  { %2478 = vmatmul.bf16.vlgmr.msrb.gmra.mxu2 %v1970_v53  ;;  %2567 = vmatmul.bf16.vlgmr.msrb.gmra.mxu3 %v1971_v58  ;;  %v1721_v58 = vadd.f32 %v4582_v27, %v4522_v60  ;;  %v1853_v53 = vmax.f32 %v1725_v62, 0.0  ;;  %v4638_v61 = vpop.f32.mrf.mxu1  ;;  %v1734_v62 = vadd.f32 %v4584_v29, %v4436_v38 }
 0x3f9   :  { %v1848_v30 = vmax.f32 %v1720_v32, 0.0  ;;  %v1974_v26 = vpack.c.bf16 %v1854_v36, %v1850_v1  ;;  %v1729_v32 = vadd.f32 %v4582_v27, %v4553_v51  ;;  %v1860_v34 = vmax.f32 %v1732_v49, 0.0 }
 0x3fa   :  { %v1849_v24 = vmax.f32 %v1721_v58, 0.0  ;;  %v1730_v58 = vadd.f32 %v4584_v29, %v4417_v44  ;;  %v1862_v25 = vmax.f32 %v1734_v62, 0.0  ;;  %v1859_v54 = vmax.f32 %v1731_v46, 0.0 }
 0x3fb   :  { %v1972_v4 = vpack.c.bf16 %v1852_v5, %v1848_v30  ;;  %v1863_v5 = vmax.f32 %v1735_v22, 0.0  ;;  %v4664_v38 = vpop.f32.mrf.mxu2  ;;  %v1857_v36 = vmax.f32 %v1729_v32, 0.0  ;;  %v1976_v44 = vpack.c.bf16 %v1860_v34, %v1856_v3 }
 0x3fc   :  { %v1973_v60 = vpack.c.bf16 %v1853_v53, %v1849_v24  ;;  %v1858_v37 = vmax.f32 %v1730_v58, 0.0  ;;  %v1743_v49 = vadd.f32 %v4586_v11, %v4455_v47  ;;  %v1737_v62 = vadd.f32 %v4582_v27, %v4299_v35 }
 0x3fd   :  { %v1977_v24 = vpack.c.bf16 %v1861_v57, %v1857_v36  ;;  %v1979_v8 = vpack.c.bf16 %v1863_v5, %v1859_v54  ;;  %v1864_v46 = vmax.f32 %v1736_v41, 0.0  ;;  %v1748_v54 = vadd.f32 %v4580_v50, %v4311_v55 }
 0x3fe   :  { %v4666_v53 = vpop.f32.mrf.mxu3  ;;  %v4668_v30 = vpop.f32.mrf.mxu0  ;;  %v1978_v1 = vpack.c.bf16 %v1862_v25, %v1858_v37  ;;  %v1871_v47 = vmax.f32 %v1743_v49, 0.0  ;;  %v1865_v34 = vmax.f32 %v1737_v62, 0.0  ;;  %v1747_v55 = vadd.f32 %v4586_v11, %v4462_v19 }
 0x400   :  { %v4646_v33 = vpop.f32.mrf.mxu1 }
 0x403   :  { %v4672_v10 = vpop.f32.mrf.mxu2 }
 0x406   :  { %v4688_v22 = vpop.f32.mrf.mxu0 }
 0x407   :  { %2305 = vmatmul.bf16.gmra.mxu0 %v1972_v4  ;;  %2394 = vmatmul.bf16.gmra.mxu1 %v1973_v60  ;;  %v4674_v4 = vpop.f32.mrf.mxu3  ;;  %v1740_v60 = vadd.f32 %v4580_v50, %v4301_v28  ;;  %v1738_v28 = vadd.f32 %v4584_v29, %v4440_v2 }
 0x408   :  { %2483 = vmatmul.bf16.gmra.mxu2 %v1974_v26  ;;  %2572 = vmatmul.bf16.gmra.mxu3 %v1975_v42  ;;  %v4670_v51 = vpop.f32.mrf.mxu1  ;;  %v1741_v26 = vadd.f32 %v4582_v27, %v4303_v14  ;;  %v1742_v42 = vadd.f32 %v4584_v29, %v4453_v9  ;;  %v1739_v14 = vadd.f32 %v4586_v11, %v4442_v6 }
 0x409   :  { %v1868_v9 = vmax.f32 %v1740_v60, 0.0  ;;  %v1866_v48 = vmax.f32 %v1738_v28, 0.0  ;;  %v1745_v60 = vadd.f32 %v4582_v27, %v4309_v31  ;;  %v1875_v31 = vmax.f32 %v1747_v55, 0.0 }
 0x40a   :  { %v1869_v32 = vmax.f32 %v1741_v26, 0.0  ;;  %v1870_v58 = vmax.f32 %v1742_v42, 0.0  ;;  %v1867_v57 = vmax.f32 %v1739_v14, 0.0  ;;  %v1746_v26 = vadd.f32 %v4584_v29, %v4460_v52 }
 0x40b   :  { %v1980_v25 = vpack.c.bf16 %v1868_v9, %v1864_v46  ;;  %v4696_v5 = vpop.f32.mrf.mxu2  ;;  %v1873_v14 = vmax.f32 %v1745_v60, 0.0  ;;  %v1756_v60 = vadd.f32 %v4580_v50, %v4321_v63 }
 0x40c   :  { %v1981_v35 = vpack.c.bf16 %v1869_v32, %v1865_v34  ;;  %v1982_v36 = vpack.c.bf16 %v1870_v58, %v1866_v48  ;;  %v1983_v37 = vpack.c.bf16 %v1871_v47, %v1867_v57  ;;  %v1874_v9 = vmax.f32 %v1746_v26, 0.0  ;;  %v4994_v26 = vld [vmem:[#allocation11_spill] sm:$0xff] }
 0x40d   :  { %v1757_v55 = vadd.f32 %v4582_v27, %v4994_v26 }
 0x40e   :  { %v4700_v2 = vpop.f32.mrf.mxu0 }
 0x40f   :  { %v4698_v3 = vpop.f32.mrf.mxu3 }
 0x410   :  { %v4690_v16 = vpop.f32.mrf.mxu1 }
 0x413   :  { %v4720_v42 = vpop.f32.mrf.mxu2 }
 0x417   :  { %2310 = vmatmul.bf16.gmra.mxu0 %v1976_v44  ;;  %2399 = vmatmul.bf16.gmra.mxu1 %v1977_v24  ;;  %v1749_v44 = vadd.f32 %v4582_v27, %v4313_v13  ;;  %v1750_v24 = vadd.f32 %v4584_v29, %v4473_v59  ;;  %v4722_v13 = vpop.f32.mrf.mxu3  ;;  %v1876_v59 = vmax.f32 %v1748_v54, 0.0 }
 0x418   :  { %2488 = vmatmul.bf16.gmra.mxu2 %v1978_v1  ;;  %2577 = vmatmul.bf16.gmra.mxu3 %v1979_v8  ;;  %v4702_v6 = vpop.f32.mrf.mxu1  ;;  %v1751_v1 = vadd.f32 %v4586_v11, %v4475_v45  ;;  %v1744_v8 = vadd.f32 %v4580_v50, %v4307_v18 }
 0x419   :  { %v1877_v49 = vmax.f32 %v1749_v44, 0.0  ;;  %v1878_v62 = vmax.f32 %v1750_v24, 0.0 }
 0x41a   :  { %v1879_v28 = vmax.f32 %v1751_v1, 0.0  ;;  %v1872_v18 = vmax.f32 %v1744_v8, 0.0  ;;  %v1752_v1 = vadd.f32 %v4580_v50, %v4317_v21  ;;  %v1753_v8 = vadd.f32 %v4582_v27, %v4319_v7 }
 0x41b   :  { %v1985_v58 = vpack.c.bf16 %v1877_v49, %v1873_v14  ;;  %v1986_v52 = vpack.c.bf16 %v1878_v62, %v1874_v9  ;;  %v4998_v14 = vld [vmem:[#allocation21_spill] sm:$0xff] }
 0x41c   :  { %v1984_v32 = vpack.c.bf16 %v1876_v59, %v1872_v18  ;;  %v1987_v47 = vpack.c.bf16 %v1879_v28, %v1875_v31  ;;  %v4995_v59 = vld [vmem:[#allocation22_spill] sm:$0xff]  ;;  %v4997_v18 = vld [vmem:[#allocation20_spill] sm:$0xff]  ;;  %v1755_v9 = vadd.f32 %v4586_v11, %v4998_v14 }
 0x41d   :  { %v1758_v49 = vadd.f32 %v4584_v29, %v4995_v59  ;;  %v1754_v63 = vadd.f32 %v4584_v29, %v4997_v18 }
 0x427   :  { %2315 = vmatmul.bf16.gmra.mxu0 %v1980_v25  ;;  %2404 = vmatmul.bf16.gmra.mxu1 %v1981_v35 }
 0x428   :  { %2493 = vmatmul.bf16.gmra.mxu2 %v1982_v36  ;;  %2582 = vmatmul.bf16.gmra.mxu3 %v1983_v37 }
 0x431   :  { %v1535_v41 = vpop.f32.mrf.mxu0  ;;  %v1584_v45 = vpop.f32.mrf.mxu1 }
 0x432   :  { %v1808_v19 = vadd.f32 %v4580_v50, %v1535_v41  ;;  %v1809_v46 = vadd.f32 %v4582_v27, %v1584_v45  ;;  %v4996_v41 = vld [vmem:[#allocation23_spill] sm:$0xff] }
 0x433   :  { %v1759_v45 = vadd.f32 %v4586_v11, %v4996_v41 }
 0x434   :  { %v1936_v37 = vmax.f32 %v1808_v19, 0.0  ;;  %v1937_v54 = vmax.f32 %v1809_v46, 0.0  ;;  %v1880_v46 = vmax.f32 %v1752_v1, 0.0 }
 0x437   :  { %2320 = vmatmul.bf16.gmra.mxu0 %v1984_v32  ;;  %2409 = vmatmul.bf16.gmra.mxu1 %v1985_v58  ;;  %v1884_v58 = vmax.f32 %v1756_v60, 0.0 }
 0x438   :  { %2498 = vmatmul.bf16.gmra.mxu2 %v1986_v52  ;;  %2587 = vmatmul.bf16.gmra.mxu3 %v1987_v47  ;;  %v1633_v34 = vpop.f32.mrf.mxu2  ;;  %v1682_v48 = vpop.f32.mrf.mxu3  ;;  %v1885_v52 = vmax.f32 %v1757_v55, 0.0 }
 0x439   :  { %v1537_v57 = vpop.f32.mrf.mxu0  ;;  %v1586_v25 = vpop.f32.mrf.mxu1  ;;  %v1810_v21 = vadd.f32 %v4584_v29, %v1633_v34  ;;  %v1811_v7 = vadd.f32 %v4586_v11, %v1682_v48  ;;  %v1887_v34 = vmax.f32 %v1759_v45, 0.0  ;;  %v1988_v59 = vpack.c.bf16 %v1884_v58, %v1880_v46  ;;  %v5001_v58 = vld [vmem:[#allocation26_spill] sm:$0xff] }
 0x43a   :  { %v1812_v35 = vadd.f32 %v4580_v50, %v1537_v57  ;;  %v1813_v36 = vadd.f32 %v4582_v27, %v1586_v25  ;;  %v1881_v57 = vmax.f32 %v1753_v8, 0.0  ;;  %v1886_v25 = vmax.f32 %v1758_v49, 0.0 }
 0x43b   :  { %v1939_v48 = vmax.f32 %v1811_v7, 0.0 }
 0x43c   :  { %v1940_v44 = vmax.f32 %v1812_v35, 0.0  ;;  %v1941_v24 = vmax.f32 %v1813_v36, 0.0  ;;  %v1938_v35 = vmax.f32 %v1810_v21, 0.0  ;;  %v1989_v41 = vpack.c.bf16 %v1885_v52, %v1881_v57  ;;  %v4999_v21 = vld [vmem:[#allocation14_spill] sm:$0xff] }
 0x43d   :  { %v1764_v7 = vadd.f32 %v4580_v50, %v4999_v21  ;;  %v1766_v52 = vadd.f32 %v4584_v29, %v5001_v58 }
 0x43e   :  { %v4740_v62 = vpack.c.bf16 %v1940_v44, %v1936_v37  ;;  %v4742_v28 = vpack.c.bf16 %v1941_v24, %v1937_v54  ;;  %v1882_v54 = vmax.f32 %v1754_v63, 0.0  ;;  %v1883_v44 = vmax.f32 %v1755_v9, 0.0  ;;  %v5000_v63 = vld [vmem:[#allocation15_spill] sm:$0xff] }
 0x43f   :  { %v1765_v9 = vadd.f32 %v4582_v27, %v5000_v63  ;;  %v1894_v21 = vmax.f32 %v1766_v52, 0.0 }
 0x440   :  { %v1635_v31 = vpop.f32.mrf.mxu2  ;;  %v1684_v32 = vpop.f32.mrf.mxu3  ;;  %v1990_v18 = vpack.c.bf16 %v1886_v25, %v1882_v54  ;;  %v1991_v14 = vpack.c.bf16 %v1887_v34, %v1883_v44  ;;  %v5003_v25 = vld [vmem:[#allocation12_spill] sm:$0xff]  ;;  %v5006_v54 = vld [vmem:[#allocation25_spill] sm:$0xff] }
 0x441   :  { %v1814_v47 = vadd.f32 %v4584_v29, %v1635_v31  ;;  %v1815_v19 = vadd.f32 %v4586_v11, %v1684_v32  ;;  %v1760_v34 = vadd.f32 %v4580_v50, %v5003_v25  ;;  %v1763_v44 = vadd.f32 %v4586_v11, %v5006_v54 }
 0x443   :  { %v1942_v36 = vmax.f32 %v1814_v47, 0.0  ;;  %v1943_v37 = vmax.f32 %v1815_v19, 0.0  ;;  %v5002_v47 = vld [vmem:[#allocation27_spill] sm:$0xff]  ;;  %v1888_v25 = vmax.f32 %v1760_v34, 0.0  ;;  %v1891_v54 = vmax.f32 %v1763_v44, 0.0 }
 0x444   :  { %v1540_v24 = vpop.f32.mrf.mxu0  ;;  %v1589_v26 = vpop.f32.mrf.mxu1  ;;  %v1767_v19 = vadd.f32 %v4586_v11, %v5002_v47 }
 0x445   :  { %v4752_v60 = vpack.c.bf16 %v1942_v36, %v1938_v35  ;;  %v4754_v55 = vpack.c.bf16 %v1943_v37, %v1939_v48  ;;  %v1816_v1 = vadd.f32 %v4580_v50, %v1540_v24  ;;  %v1817_v8 = vadd.f32 %v4582_v27, %v1589_v26  ;;  %v5004_v35 = vld [vmem:[#allocation13_spill] sm:$0xff]  ;;  %v5005_v36 = vld [vmem:[#allocation24_spill] sm:$0xff] }
 0x446   :  { %v1761_v48 = vadd.f32 %v4582_v27, %v5004_v35  ;;  %v1762_v37 = vadd.f32 %v4584_v29, %v5005_v36  ;;  %v1895_v63 = vmax.f32 %v1767_v19, 0.0 }
 0x447   :  { %2325 = vmatmul.bf16.gmra.mxu0 %v1988_v59  ;;  %2414 = vmatmul.bf16.gmra.mxu1 %v1989_v41  ;;  %v1944_v24 = vmax.f32 %v1816_v1, 0.0  ;;  %v1945_v26 = vmax.f32 %v1817_v8, 0.0 }
 0x448   :  { %2503 = vmatmul.bf16.gmra.mxu2 %v1990_v18  ;;  %2592 = vmatmul.bf16.gmra.mxu3 %v1991_v14  ;;  %v1892_v18 = vmax.f32 %v1764_v7, 0.0  ;;  %v1893_v14 = vmax.f32 %v1765_v9, 0.0  ;;  %v1889_v35 = vmax.f32 %v1761_v48, 0.0  ;;  %v1890_v36 = vmax.f32 %v1762_v37, 0.0 }
 0x44a   :  { %v1992_v19 = vpack.c.bf16 %v1892_v18, %v1888_v25 }
 0x44b   :  { %v1638_v49 = vpop.f32.mrf.mxu2  ;;  %v1687_v45 = vpop.f32.mrf.mxu3 }
 0x44c   :  { %v1542_v31 = vpop.f32.mrf.mxu0  ;;  %v1591_v32 = vpop.f32.mrf.mxu1  ;;  %v1818_v58 = vadd.f32 %v4584_v29, %v1638_v49  ;;  %v1819_v47 = vadd.f32 %v4586_v11, %v1687_v45 }
 0x44d   :  { %v1820_v46 = vadd.f32 %v4580_v50, %v1542_v31  ;;  %v1821_v57 = vadd.f32 %v4582_v27, %v1591_v32 }
 0x44e   :  { %v1947_v49 = vmax.f32 %v1819_v47, 0.0 }
 0x44f   :  { %v1948_v59 = vmax.f32 %v1820_v46, 0.0  ;;  %v1949_v41 = vmax.f32 %v1821_v57, 0.0  ;;  %v1993_v57 = vpack.c.bf16 %v1893_v14, %v1889_v35 }
 0x451   :  { %v4776_v31 = vpack.c.bf16 %v1948_v59, %v1944_v24  ;;  %v4778_v32 = vpack.c.bf16 %v1949_v41, %v1945_v26  ;;  %v1994_v24 = vpack.c.bf16 %v1894_v21, %v1890_v36  ;;  %v1995_v26 = vpack.c.bf16 %v1895_v63, %v1891_v54  ;;  %v5011_v21 = vld [vmem:[#allocation18_spill] sm:$0xff] }
 0x452   :  { %v1946_v59 = vmax.f32 %v1818_v58, 0.0  ;;  %v1772_v63 = vadd.f32 %v4580_v50, %v5011_v21  ;;  %v5012_v58 = vld [vmem:[#allocation19_spill] sm:$0xff]  ;;  %v5013_v36 = vld [vmem:[#allocation30_spill] sm:$0xff] }
 0x453   :  { %5007 = vst [vmem:[#allocation11_spill] sm:$0xff] %v4776_v31  ;;  %v1640_v1 = vpop.f32.mrf.mxu2  ;;  %v1689_v8 = vpop.f32.mrf.mxu3  ;;  %v1773_v47 = vadd.f32 %v4582_v27, %v5012_v58  ;;  %v1774_v54 = vadd.f32 %v4584_v29, %v5013_v36 }
 0x454   :  { %5008 = vst [vmem:[#allocation22_spill] sm:$0xff] %v4778_v32  ;;  %v1822_v46 = vadd.f32 %v4584_v29, %v1640_v1  ;;  %v1823_v7 = vadd.f32 %v4586_v11, %v1689_v8  ;;  %v1545_v9 = vpop.f32.mrf.mxu0  ;;  %v1594_v52 = vpop.f32.mrf.mxu1  ;;  %v5014_v1 = vld [vmem:[#allocation31_spill] sm:$0xff]  ;;  %v1900_v36 = vmax.f32 %v1772_v63, 0.0 }
 0x455   :  { %v1824_v37 = vadd.f32 %v4580_v50, %v1545_v9  ;;  %v1825_v44 = vadd.f32 %v4582_v27, %v1594_v52  ;;  %v1775_v8 = vadd.f32 %v4586_v11, %v5014_v1  ;;  %v5015_v9 = vld [vmem:[#allocation16_spill] sm:$0xff]  ;;  %v1902_v1 = vmax.f32 %v1774_v54, 0.0 }
 0x456   :  { %v1950_v41 = vmax.f32 %v1822_v46, 0.0  ;;  %v1951_v45 = vmax.f32 %v1823_v7, 0.0  ;;  %v1768_v52 = vadd.f32 %v4580_v50, %v5015_v9 }
 0x457   :  { %2330 = vmatmul.bf16.gmra.mxu0 %v1992_v19  ;;  %2419 = vmatmul.bf16.gmra.mxu1 %v1993_v57  ;;  %v5016_v19 = vld [vmem:[#allocation17_spill] sm:$0xff] }
 0x458   :  { %2508 = vmatmul.bf16.gmra.mxu2 %v1994_v24  ;;  %2597 = vmatmul.bf16.gmra.mxu3 %v1995_v26  ;;  %v4784_v34 = vpack.c.bf16 %v1950_v41, %v1946_v59  ;;  %v4786_v48 = vpack.c.bf16 %v1951_v45, %v1947_v49  ;;  %v1769_v57 = vadd.f32 %v4582_v27, %v5016_v19  ;;  %v5017_v24 = vld [vmem:[#allocation28_spill] sm:$0xff]  ;;  %v5018_v59 = vld [vmem:[#allocation29_spill] sm:$0xff]  ;;  %v1952_v41 = vmax.f32 %v1824_v37, 0.0 }
 0x459   :  { %v1770_v26 = vadd.f32 %v4584_v29, %v5017_v24  ;;  %v1771_v49 = vadd.f32 %v4586_v11, %v5018_v59  ;;  %v1953_v45 = vmax.f32 %v1825_v44, 0.0  ;;  %v1896_v24 = vmax.f32 %v1768_v52, 0.0 }
 0x45a   :  { %5009 = vst [vmem:[#allocation23_spill] sm:$0xff] %v4784_v34  ;;  %v1897_v32 = vmax.f32 %v1769_v57, 0.0 }
 0x45b   :  { %5010 = vst [vmem:[#allocation20_spill] sm:$0xff] %v4786_v48  ;;  %v1643_v18 = vpop.f32.mrf.mxu2  ;;  %v1692_v14 = vpop.f32.mrf.mxu3  ;;  %v1898_v31 = vmax.f32 %v1770_v26, 0.0  ;;  %v1899_v59 = vmax.f32 %v1771_v49, 0.0 }
 0x45c   :  { %v1547_v25 = vpop.f32.mrf.mxu0  ;;  %v1596_v35 = vpop.f32.mrf.mxu1  ;;  %v1826_v19 = vadd.f32 %v4584_v29, %v1643_v18  ;;  %v1827_v34 = vadd.f32 %v4586_v11, %v1692_v14 }
 0x45d   :  { %v1828_v46 = vadd.f32 %v4580_v50, %v1547_v25  ;;  %v1829_v7 = vadd.f32 %v4582_v27, %v1596_v35  ;;  %v1901_v25 = vmax.f32 %v1773_v47, 0.0  ;;  %v1903_v35 = vmax.f32 %v1775_v8, 0.0 }
 0x45e   :  { %v1996_v8 = vpack.c.bf16 %v1900_v36, %v1896_v24  ;;  %v1955_v18 = vmax.f32 %v1827_v34, 0.0  ;;  %v5022_v34 = vld [vmem:[#allocation37_spill] sm:$0xff]  ;;  %v1782_v24 = vadd.f32 %v4584_v29, %v4608_v40 }
 0x45f   :  { %v1956_v21 = vmax.f32 %v1828_v46, 0.0  ;;  %v1957_v58 = vmax.f32 %v1829_v7, 0.0  ;;  %v1997_v7 = vpack.c.bf16 %v1901_v25, %v1897_v32 }
 0x461   :  { %v4808_v48 = vpack.c.bf16 %v1956_v21, %v1952_v41  ;;  %v4810_v9 = vpack.c.bf16 %v1957_v58, %v1953_v45  ;;  %v1998_v41 = vpack.c.bf16 %v1902_v1, %v1898_v31  ;;  %v1999_v45 = vpack.c.bf16 %v1903_v35, %v1899_v59  ;;  %v5021_v31 = vld [vmem:[#allocation36_spill] sm:$0xff] }
 0x462   :  { %v1954_v21 = vmax.f32 %v1826_v19, 0.0  ;;  %v1780_v25 = vadd.f32 %v4580_v50, %v5021_v31  ;;  %v1781_v1 = vadd.f32 %v4582_v27, %v5022_v34  ;;  %v1783_v59 = vadd.f32 %v4586_v11, %v4610_v39 }
 0x463   :  { %v1645_v37 = vpop.f32.mrf.mxu2  ;;  %v1694_v44 = vpop.f32.mrf.mxu3  ;;  %v1910_v31 = vmax.f32 %v1782_v24, 0.0 }
 0x464   :  { %v1830_v46 = vadd.f32 %v4584_v29, %v1645_v37  ;;  %v1831_v63 = vadd.f32 %v4586_v11, %v1694_v44  ;;  %v1550_v47 = vpop.f32.mrf.mxu0  ;;  %v1599_v54 = vpop.f32.mrf.mxu1  ;;  %v1911_v34 = vmax.f32 %v1783_v59, 0.0 }
 0x465   :  { %v1832_v26 = vadd.f32 %v4580_v50, %v1550_v47  ;;  %v1833_v49 = vadd.f32 %v4582_v27, %v1599_v54  ;;  %v5024_v47 = vld [vmem:[#allocation33_spill] sm:$0xff] }
 0x466   :  { %v1958_v58 = vmax.f32 %v1830_v46, 0.0  ;;  %v1959_v14 = vmax.f32 %v1831_v63, 0.0  ;;  %v5023_v46 = vld [vmem:[#allocation32_spill] sm:$0xff]  ;;  %v1777_v54 = vadd.f32 %v4582_v27, %v5024_v47 }
 0x467   :  { %2335 = vmatmul.bf16.gmra.mxu0 %v1996_v8  ;;  %2424 = vmatmul.bf16.gmra.mxu1 %v1997_v7  ;;  %v1776_v63 = vadd.f32 %v4580_v50, %v5023_v46  ;;  %v5025_v8 = vld [vmem:[#allocation34_spill] sm:$0xff]  ;;  %v1960_v40 = vmax.f32 %v1832_v26, 0.0 }
 0x468   :  { %2513 = vmatmul.bf16.gmra.mxu2 %v1998_v41  ;;  %2602 = vmatmul.bf16.gmra.mxu3 %v1999_v45  ;;  %v4816_v52 = vpack.c.bf16 %v1958_v58, %v1954_v21  ;;  %v4818_v57 = vpack.c.bf16 %v1959_v14, %v1955_v18  ;;  %v1778_v7 = vadd.f32 %v4584_v29, %v5025_v8  ;;  %v5026_v41 = vld [vmem:[#allocation35_spill] sm:$0xff]  ;;  %v1961_v21 = vmax.f32 %v1833_v49, 0.0 }
 0x469   :  { %v1779_v45 = vadd.f32 %v4586_v11, %v5026_v41  ;;  %v1908_v58 = vmax.f32 %v1780_v25, 0.0  ;;  %v1909_v14 = vmax.f32 %v1781_v1, 0.0  ;;  %v1904_v8 = vmax.f32 %v1776_v63, 0.0  ;;  %v4851_v63 = vld [vmem:[%s4965_s6] ss:$0 sm:$0xff]  ;;  %s3758_s6 = smov [#allocation7]  }
 0x46a   :  { %5019 = vst [vmem:[#allocation21_spill] sm:$0xff] %v4816_v52  ;;  %v1906_v52 = vmax.f32 %v1778_v7, 0.0  ;;  %s2716_s21 = sshll.u32 %s3758_s6, 4  ;;  %s2717_s21 = int_to_ptr.vmem [resolvable:$true] %s2716_s21 }
 0x46b   :  { %5020 = vst [vmem:[#allocation14_spill] sm:$0xff] %v4818_v57  ;;  %v1648_v36 = vpop.f32.mrf.mxu2  ;;  %v1697_v32 = vpop.f32.mrf.mxu3  ;;  %v1905_v57 = vmax.f32 %v1777_v54, 0.0  ;;  %v1907_v41 = vmax.f32 %v1779_v45, 0.0  ;;  %v2000_v59 = vpack.c.bf16 %v1908_v58, %v1904_v8 }
 0x46c   :  { %v1552_v35 = vpop.f32.mrf.mxu0  ;;  %v1601_v19 = vpop.f32.mrf.mxu1  ;;  %v1834_v46 = vadd.f32 %v4584_v29, %v1648_v36  ;;  %v1835_v47 = vadd.f32 %v4586_v11, %v1697_v32 }
 0x46d   :  { %v1836_v37 = vadd.f32 %v4580_v50, %v1552_v35  ;;  %v1837_v44 = vadd.f32 %v4582_v27, %v1601_v19 }
 0x46e   :  { %v1963_v36 = vmax.f32 %v1835_v47, 0.0  ;;  %v1791_v47 = vadd.f32 %v4586_v11, %v4642_v0 }
 0x46f   :  { %v1964_v18 = vmax.f32 %v1836_v37, 0.0  ;;  %v1965_v39 = vmax.f32 %v1837_v44, 0.0  ;;  %v2001_v44 = vpack.c.bf16 %v1909_v14, %v1905_v57 }
 0x471   :  { %v4840_v35 = vpack.c.bf16 %v1964_v18, %v1960_v40  ;;  %v4842_v19 = vpack.c.bf16 %v1965_v39, %v1961_v21  ;;  %v2002_v40 = vpack.c.bf16 %v1910_v31, %v1906_v52  ;;  %v2003_v21 = vpack.c.bf16 %v1911_v34, %v1907_v41 }
 0x472   :  { %v1962_v18 = vmax.f32 %v1834_v46, 0.0  ;;  %v1788_v31 = vadd.f32 %v4580_v50, %v4636_v20  ;;  %v1789_v34 = vadd.f32 %v4582_v27, %v4638_v61  ;;  %v1790_v46 = vadd.f32 %v4584_v29, %v4640_v43 }
 0x473   :  { %v1650_v26 = vpop.f32.mrf.mxu2  ;;  %v1699_v49 = vpop.f32.mrf.mxu3  ;;  %v1784_v41 = vadd.f32 %v4580_v50, %v4612_v56  ;;  %v1786_v20 = vadd.f32 %v4584_v29, %v4624_v23  ;;  %v1787_v61 = vadd.f32 %v4586_v11, %v4626_v15 }
 0x474   :  { %v1838_v37 = vadd.f32 %v4584_v29, %v1650_v26  ;;  %v1839_v25 = vadd.f32 %v4586_v11, %v1699_v49  ;;  %v2301_v1 = vpop.f32.mrf.mxu0  ;;  %v2390_v24 = vpop.f32.mrf.mxu1  ;;  %v1785_v26 = vadd.f32 %v4582_v27, %v4614_v12  ;;  %v1917_v43 = vmax.f32 %v1789_v34, 0.0 }
 0x475   :  { %v2302_v45 = vadd.f32 %v4851_v63, %v2301_v1  ;;  %v1919_v1 = vmax.f32 %v1791_v47, 0.0 }
 0x476   :  { %v1966_v39 = vmax.f32 %v1838_v37, 0.0  ;;  %v1967_v32 = vmax.f32 %v1839_v25, 0.0  ;;  %v1916_v37 = vmax.f32 %v1788_v31, 0.0  ;;  %v1918_v25 = vmax.f32 %v1790_v46, 0.0 }
 0x477   :  { %2340 = vmatmul.bf16.gmra.mxu0 %v2000_v59  ;;  %2429 = vmatmul.bf16.gmra.mxu1 %v2001_v44  ;;  %v2391_v49 = vadd.f32 %v2390_v24, %v2302_v45  ;;  %v1912_v44 = vmax.f32 %v1784_v41, 0.0  ;;  %v1798_v41 = vadd.f32 %v4584_v29, %v4672_v10 }
 0x478   :  { %2518 = vmatmul.bf16.gmra.mxu2 %v2002_v40  ;;  %2607 = vmatmul.bf16.gmra.mxu3 %v2003_v21  ;;  %v4853_v54 = vpack.c.bf16 %v1966_v39, %v1962_v18  ;;  %v4855_v7 = vpack.c.bf16 %v1967_v32, %v1963_v36  ;;  %v1913_v40 = vmax.f32 %v1785_v26, 0.0  ;;  %v1914_v18 = vmax.f32 %v1786_v20, 0.0 }
 0x479   :  { %v1915_v36 = vmax.f32 %v1787_v61, 0.0  ;;  %v2004_v23 = vpack.c.bf16 %v1916_v37, %v1912_v44  ;;  %v1792_v20 = vadd.f32 %v4580_v50, %v4644_v17  ;;  %v1793_v61 = vadd.f32 %v4582_v27, %v4646_v33 }
 0x47a   :  { %5027 = vst [vmem:[#allocation15_spill] sm:$0xff] %v4855_v7  ;;  %v2006_v24 = vpack.c.bf16 %v1918_v25, %v1914_v18 }
 0x47b   :  { %v2479_v57 = vpop.f32.mrf.mxu2  ;;  %v2568_v52 = vpop.f32.mrf.mxu3  ;;  %v2007_v45 = vpack.c.bf16 %v1919_v1, %v1915_v36 }
 0x47c   :  { %v2303_v58 = vpop.f32.mrf.mxu0  ;;  %v2392_v14 = vpop.f32.mrf.mxu1  ;;  %v2480_v0 = vadd.f32 %v2479_v57, %v2391_v49 }
 0x47d   :  { %v2304_v8 = vadd.f32 %v4851_v63, %v2303_v58  ;;  %v2005_v58 = vpack.c.bf16 %v1917_v43, %v1913_v40  ;;  %v1926_v43 = vmax.f32 %v1798_v41, 0.0 }
 0x47e   :  { %v2569_v7 = vadd.f32 %v2568_v52, %v2480_v0  ;;  %v1797_v52 = vadd.f32 %v4582_v27, %v4670_v51  ;;  %v1795_v51 = vadd.f32 %v4586_v11, %v4666_v53  ;;  %v1920_v0 = vmax.f32 %v1792_v20, 0.0 }
 0x47f   :  { %v2393_v59 = vadd.f32 %v2392_v14, %v2304_v8  ;;  %v1796_v8 = vadd.f32 %v4580_v50, %v4668_v30  ;;  %v1794_v30 = vadd.f32 %v4584_v29, %v4664_v38 }
 0x480   :  { %v1925_v10 = vmax.f32 %v1797_v52, 0.0  ;;  %v1801_v52 = vadd.f32 %v4582_v27, %v4690_v16 }
 0x481   :  { %v1924_v37 = vmax.f32 %v1796_v8, 0.0  ;;  %v1922_v40 = vmax.f32 %v1794_v30, 0.0  ;;  %v1800_v8 = vadd.f32 %v4580_v50, %v4688_v22 }
 0x483   :  { %v2481_v21 = vpop.f32.mrf.mxu2  ;;  %v2570_v56 = vpop.f32.mrf.mxu3  ;;  %v2008_v38 = vpack.c.bf16 %v1924_v37, %v1920_v0  ;;  %v1928_v30 = vmax.f32 %v1800_v8, 0.0 }
 0x484   :  { %v2482_v12 = vadd.f32 %v2481_v21, %v2393_v59  ;;  %v2306_v39 = vpop.f32.mrf.mxu0  ;;  %v2395_v32 = vpop.f32.mrf.mxu1  ;;  %v1921_v59 = vmax.f32 %v1793_v61, 0.0  ;;  %v1923_v21 = vmax.f32 %v1795_v51, 0.0  ;;  %v1929_v51 = vmax.f32 %v1801_v52, 0.0 }
 0x485   :  { %v2307_v34 = vadd.f32 %v4851_v63, %v2306_v39  ;;  %v2010_v39 = vpack.c.bf16 %v1926_v43, %v1922_v40 }
 0x486   :  { %v2571_v15 = vadd.f32 %v2570_v56, %v2482_v12  ;;  %v2009_v36 = vpack.c.bf16 %v1925_v10, %v1921_v59 }
 0x487   :  { %2345 = vmatmul.bf16.gmra.mxu0 %v2004_v23  ;;  %2434 = vmatmul.bf16.gmra.mxu1 %v2005_v58  ;;  %v2396_v49 = vadd.f32 %v2395_v32, %v2307_v34  ;;  %v1806_v34 = vadd.f32 %v4584_v29, %v4720_v42 }
 0x488   :  { %v3423_v31 = vpack.c.bf16 %v2571_v15, %v2569_v7  ;;  %2523 = vmatmul.bf16.gmra.mxu2 %v2006_v24  ;;  %2612 = vmatmul.bf16.gmra.mxu3 %v2007_v45  ;;  %v1799_v7 = vadd.f32 %v4586_v11, %v4674_v4 }
 0x48a   :  { %3424 = vst [vmem:[#allocation7] sm:$0xff] %v3423_v31   ;;  %v1927_v25 = vmax.f32 %v1799_v7, 0.0 }
 0x48b   :  { %v2484_v57 = vpop.f32.mrf.mxu2  ;;  %v2573_v14 = vpop.f32.mrf.mxu3 }
 0x48c   :  { %v2308_v46 = vpop.f32.mrf.mxu0  ;;  %v2397_v47 = vpop.f32.mrf.mxu1  ;;  %v2485_v4 = vadd.f32 %v2484_v57, %v2396_v49  ;;  %v2011_v32 = vpack.c.bf16 %v1927_v25, %v1923_v21  ;;  %v1804_v57 = vadd.f32 %v4580_v50, %v4700_v2  ;;  %v1802_v2 = vadd.f32 %v4584_v29, %v4696_v5 }
 0x48d   :  { %v2309_v26 = vadd.f32 %v4851_v63, %v2308_v46  ;;  %v1807_v46 = vadd.f32 %v4586_v11, %v4722_v13 }
 0x48e   :  { %v2574_v12 = vadd.f32 %v2573_v14, %v2485_v4  ;;  %v1805_v14 = vadd.f32 %v4582_v27, %v4702_v6  ;;  %v1803_v6 = vadd.f32 %v4586_v11, %v4698_v3  ;;  %v1932_v7 = vmax.f32 %v1804_v57, 0.0 }
 0x48f   :  { %v2398_v1 = vadd.f32 %v2397_v47, %v2309_v26  ;;  %v1934_v26 = vmax.f32 %v1806_v34, 0.0  ;;  %v1935_v20 = vmax.f32 %v1807_v46, 0.0  ;;  %v1930_v22 = vmax.f32 %v1802_v2, 0.0 }
 0x490   :  { %v1933_v42 = vmax.f32 %v1805_v14, 0.0  ;;  %v1931_v37 = vmax.f32 %v1803_v6, 0.0  ;;  %v2012_v29 = vpack.c.bf16 %v1932_v7, %v1928_v30  ;;  %v5029_v6 = vld [vmem:[#allocation22_spill] sm:$0xff]  ;;  %v5030_v7 = vld [vmem:[#allocation23_spill] sm:$0xff] }
 0x491   :  { %v2014_v3 = vpack.c.bf16 %v1934_v26, %v1930_v22 }
 0x492   :  { %v2013_v5 = vpack.c.bf16 %v1933_v42, %v1929_v51  ;;  %v2015_v25 = vpack.c.bf16 %v1935_v20, %v1931_v37  ;;  %v5031_v42 = vld [vmem:[#allocation20_spill] sm:$0xff] }
 0x493   :  { %v2486_v44 = vpop.f32.mrf.mxu2  ;;  %v2575_v17 = vpop.f32.mrf.mxu3 }
 0x494   :  { %v2487_v33 = vadd.f32 %v2486_v44, %v2398_v1  ;;  %v2311_v56 = vpop.f32.mrf.mxu0  ;;  %v2400_v18 = vpop.f32.mrf.mxu1 }
 0x495   :  { %v2312_v24 = vadd.f32 %v4851_v63, %v2311_v56 }
 0x496   :  { %v2576_v53 = vadd.f32 %v2575_v17, %v2487_v33 }
 0x497   :  { %2350 = vmatmul.bf16.gmra.mxu0 %v2008_v38  ;;  %2439 = vmatmul.bf16.gmra.mxu1 %v2009_v36  ;;  %v2401_v41 = vadd.f32 %v2400_v18, %v2312_v24 }
 0x498   :  { %v3428_v23 = vpack.c.bf16 %v2576_v53, %v2574_v12  ;;  %2528 = vmatmul.bf16.gmra.mxu2 %v2010_v39  ;;  %2617 = vmatmul.bf16.gmra.mxu3 %v2011_v32 }
 0x49a   :  { %3507 = vst [vmem:[#allocation7 + $0x8] sm:$0xff] %v3428_v23  }
 0x49b   :  { %v2489_v58 = vpop.f32.mrf.mxu2  ;;  %v2578_v15 = vpop.f32.mrf.mxu3 }
 0x49c   :  { %v2313_v45 = vpop.f32.mrf.mxu0  ;;  %v2402_v31 = vpop.f32.mrf.mxu1  ;;  %v2490_v13 = vadd.f32 %v2489_v58, %v2401_v41 }
 0x49d   :  { %v2314_v47 = vadd.f32 %v4851_v63, %v2313_v45 }
 0x49e   :  { %v2579_v43 = vadd.f32 %v2578_v15, %v2490_v13 }
 0x49f   :  { %v2403_v61 = vadd.f32 %v2402_v31, %v2314_v47 }
 0x4a3   :  { %v2491_v49 = vpop.f32.mrf.mxu2  ;;  %v2580_v50 = vpop.f32.mrf.mxu3 }
 0x4a4   :  { %v2492_v27 = vadd.f32 %v2491_v49, %v2403_v61  ;;  %v2316_v16 = vpop.f32.mrf.mxu0  ;;  %v2405_v10 = vpop.f32.mrf.mxu1 }
 0x4a5   :  { %v2317_v59 = vadd.f32 %v4851_v63, %v2316_v16 }
 0x4a6   :  { %v2581_v11 = vadd.f32 %v2580_v50, %v2492_v27 }
 0x4a7   :  { %2355 = vmatmul.bf16.gmra.mxu0 %v2012_v29  ;;  %2444 = vmatmul.bf16.gmra.mxu1 %v2013_v5  ;;  %v2406_v21 = vadd.f32 %v2405_v10, %v2317_v59 }
 0x4a8   :  { %v3433_v4 = vpack.c.bf16 %v2581_v11, %v2579_v43  ;;  %2533 = vmatmul.bf16.gmra.mxu2 %v2014_v3  ;;  %2622 = vmatmul.bf16.gmra.mxu3 %v2015_v25  ;;  %v5032_v3 = vld [vmem:[#allocation21_spill] sm:$0xff]  ;;  %v5033_v25 = vld [vmem:[#allocation14_spill] sm:$0xff] }
 0x4aa   :  { %3508 = vst [vmem:[#allocation7 + $0x10] sm:$0xff] %v3433_v4  }
 0x4ab   :  { %v2494_v1 = vpop.f32.mrf.mxu2  ;;  %v2583_v0 = vpop.f32.mrf.mxu3 }
 0x4ac   :  { %v2318_v44 = vpop.f32.mrf.mxu0  ;;  %v2407_v17 = vpop.f32.mrf.mxu1  ;;  %v2495_v33 = vadd.f32 %v2494_v1, %v2406_v21 }
 0x4ad   :  { %v2319_v40 = vadd.f32 %v4851_v63, %v2318_v44 }
 0x4ae   :  { %v2584_v39 = vadd.f32 %v2583_v0, %v2495_v33 }
 0x4af   :  { %v2408_v56 = vadd.f32 %v2407_v17, %v2319_v40 }
 0x4b3   :  { %v2496_v18 = vpop.f32.mrf.mxu2  ;;  %v2585_v38 = vpop.f32.mrf.mxu3 }
 0x4b4   :  { %v2497_v36 = vadd.f32 %v2496_v18, %v2408_v56  ;;  %v2321_v12 = vpop.f32.mrf.mxu0  ;;  %v2410_v53 = vpop.f32.mrf.mxu1 }
 0x4b5   :  { %v2322_v24 = vadd.f32 %v4851_v63, %v2321_v12 }
 0x4b6   :  { %v2586_v32 = vadd.f32 %v2585_v38, %v2497_v36 }
 0x4b7   :  { %2360 = vmatmul.bf16.gmra.mxu0 %v4740_v62  ;;  %2449 = vmatmul.bf16.gmra.mxu1 %v4742_v28  ;;  %v2411_v14 = vadd.f32 %v2410_v53, %v2322_v24 }
 0x4b8   :  { %v3438_v23 = vpack.c.bf16 %v2586_v32, %v2584_v39  ;;  %2538 = vmatmul.bf16.gmra.mxu2 %v4752_v60  ;;  %2627 = vmatmul.bf16.gmra.mxu3 %v4754_v55  ;;  %v5028_v55 = vld [vmem:[#allocation11_spill] sm:$0xff] }
 0x4b9   :  { %v5034_v39 = vld [vmem:[#allocation15_spill] sm:$0xff] }
 0x4ba   :  { %3509 = vst [vmem:[#allocation7 + $0x18] sm:$0xff] %v3438_v23  }
 0x4bb   :  { %v2499_v58 = vpop.f32.mrf.mxu2  ;;  %v2588_v15 = vpop.f32.mrf.mxu3 }
 0x4bc   :  { %v2323_v45 = vpop.f32.mrf.mxu0  ;;  %v2412_v31 = vpop.f32.mrf.mxu1  ;;  %v2500_v34 = vadd.f32 %v2499_v58, %v2411_v14 }
 0x4bd   :  { %v2324_v57 = vadd.f32 %v4851_v63, %v2323_v45 }
 0x4be   :  { %v2589_v60 = vadd.f32 %v2588_v15, %v2500_v34 }
 0x4bf   :  { %v2413_v46 = vadd.f32 %v2412_v31, %v2324_v57 }
 0x4c3   :  { %v2501_v62 = vpop.f32.mrf.mxu2  ;;  %v2590_v47 = vpop.f32.mrf.mxu3 }
 0x4c4   :  { %v2502_v28 = vadd.f32 %v2501_v62, %v2413_v46  ;;  %v2326_v8 = vpop.f32.mrf.mxu0  ;;  %v2415_v52 = vpop.f32.mrf.mxu1 }
 0x4c5   :  { %v2327_v13 = vadd.f32 %v4851_v63, %v2326_v8 }
 0x4c6   :  { %v2591_v2 = vadd.f32 %v2590_v47, %v2502_v28 }
 0x4c7   :  { %2365 = vmatmul.bf16.gmra.mxu0 %v5028_v55  ;;  %2454 = vmatmul.bf16.gmra.mxu1 %v5029_v6  ;;  %v2416_v49 = vadd.f32 %v2415_v52, %v2327_v13 }
 0x4c8   :  { %v3443_v41 = vpack.c.bf16 %v2591_v2, %v2589_v60  ;;  %2543 = vmatmul.bf16.gmra.mxu2 %v5030_v7  ;;  %2632 = vmatmul.bf16.gmra.mxu3 %v5031_v42 }
 0x4ca   :  { %3510 = vst [vmem:[#allocation7 + $0x20] sm:$0xff] %v3443_v41  }
 0x4cb   :  { %v2504_v26 = vpop.f32.mrf.mxu2  ;;  %v2593_v20 = vpop.f32.mrf.mxu3 }
 0x4cc   :  { %v2328_v61 = vpop.f32.mrf.mxu0  ;;  %v2417_v30 = vpop.f32.mrf.mxu1  ;;  %v2505_v50 = vadd.f32 %v2504_v26, %v2416_v49 }
 0x4cd   :  { %v2329_v51 = vadd.f32 %v4851_v63, %v2328_v61 }
 0x4ce   :  { %v2594_v5 = vadd.f32 %v2593_v20, %v2505_v50 }
 0x4cf   :  { %v2418_v22 = vadd.f32 %v2417_v30, %v2329_v51 }
 0x4d3   :  { %v2506_v37 = vpop.f32.mrf.mxu2  ;;  %v2595_v27 = vpop.f32.mrf.mxu3 }
 0x4d4   :  { %v2507_v16 = vadd.f32 %v2506_v37, %v2418_v22  ;;  %v2331_v10 = vpop.f32.mrf.mxu0  ;;  %v2420_v29 = vpop.f32.mrf.mxu1 }
 0x4d5   :  { %v2332_v0 = vadd.f32 %v4851_v63, %v2331_v10 }
 0x4d6   :  { %v2596_v43 = vadd.f32 %v2595_v27, %v2507_v16 }
 0x4d7   :  { %2370 = vmatmul.bf16.gmra.mxu0 %v4808_v48  ;;  %2459 = vmatmul.bf16.gmra.mxu1 %v4810_v9  ;;  %v2421_v40 = vadd.f32 %v2420_v29, %v2332_v0 }
 0x4d8   :  { %v3448_v11 = vpack.c.bf16 %v2596_v43, %v2594_v5  ;;  %2548 = vmatmul.bf16.gmra.mxu2 %v5032_v3  ;;  %2637 = vmatmul.bf16.gmra.mxu3 %v5033_v25 }
 0x4da   :  { %3511 = vst [vmem:[#allocation7 + $0x28] sm:$0xff] %v3448_v11  }
 0x4db   :  { %v2509_v4 = vpop.f32.mrf.mxu2  ;;  %v2598_v1 = vpop.f32.mrf.mxu3 }
 0x4dc   :  { %v2333_v59 = vpop.f32.mrf.mxu0  ;;  %v2422_v44 = vpop.f32.mrf.mxu1  ;;  %v2510_v21 = vadd.f32 %v2509_v4, %v2421_v40 }
 0x4dd   :  { %v2334_v17 = vadd.f32 %v4851_v63, %v2333_v59 }
 0x4de   :  { %v2599_v36 = vadd.f32 %v2598_v1, %v2510_v21 }
 0x4df   :  { %v2423_v33 = vadd.f32 %v2422_v44, %v2334_v17 }
 0x4e3   :  { %v2511_v48 = vpop.f32.mrf.mxu2  ;;  %v2600_v56 = vpop.f32.mrf.mxu3 }
 0x4e4   :  { %v2512_v9 = vadd.f32 %v2511_v48, %v2423_v33  ;;  %v2336_v18 = vpop.f32.mrf.mxu0  ;;  %v2425_v38 = vpop.f32.mrf.mxu1 }
 0x4e5   :  { %v2337_v58 = vadd.f32 %v4851_v63, %v2336_v18 }
 0x4e6   :  { %v2601_v12 = vadd.f32 %v2600_v56, %v2512_v9 }
 0x4e7   :  { %2375 = vmatmul.bf16.gmra.mxu0 %v4840_v35  ;;  %2464 = vmatmul.bf16.gmra.mxu1 %v4842_v19  ;;  %v2426_v31 = vadd.f32 %v2425_v38, %v2337_v58 }
 0x4e8   :  { %v3453_v53 = vpack.c.bf16 %v2601_v12, %v2599_v36  ;;  %2553 = vmatmul.bf16.gmra.mxu2 %v4853_v54  ;;  %2642 = vmatmul.bf16.gmra.mxu3 %v5034_v39 }
 0x4ea   :  { %3512 = vst [vmem:[#allocation7 + $0x30] sm:$0xff] %v3453_v53  }
 0x4eb   :  { %v2514_v32 = vpop.f32.mrf.mxu2  ;;  %v2603_v23 = vpop.f32.mrf.mxu3 }
 0x4ec   :  { %v2338_v15 = vpop.f32.mrf.mxu0  ;;  %v2427_v24 = vpop.f32.mrf.mxu1  ;;  %v2515_v57 = vadd.f32 %v2514_v32, %v2426_v31 }
 0x4ed   :  { %v2339_v45 = vadd.f32 %v4851_v63, %v2338_v15 }
 0x4ee   :  { %v2604_v54 = vadd.f32 %v2603_v23, %v2515_v57 }
 0x4ef   :  { %v2428_v14 = vadd.f32 %v2427_v24, %v2339_v45 }
 0x4f3   :  { %v2516_v35 = vpop.f32.mrf.mxu2  ;;  %v2605_v34 = vpop.f32.mrf.mxu3 }
 0x4f4   :  { %v2517_v19 = vadd.f32 %v2516_v35, %v2428_v14  ;;  %v2341_v46 = vpop.f32.mrf.mxu0  ;;  %v2430_v62 = vpop.f32.mrf.mxu1 }
 0x4f5   :  { %v2342_v60 = vadd.f32 %v4851_v63, %v2341_v46 }
 0x4f6   :  { %v2606_v47 = vadd.f32 %v2605_v34, %v2517_v19 }
 0x4f7   :  { %v2431_v41 = vadd.f32 %v2430_v62, %v2342_v60 }
 0x4f8   :  { %v3458_v28 = vpack.c.bf16 %v2606_v47, %v2604_v54 }
 0x4fa   :  { %3513 = vst [vmem:[#allocation7 + $0x38] sm:$0xff] %v3458_v28  }
 0x4fb   :  { %v2519_v8 = vpop.f32.mrf.mxu2  ;;  %v2608_v52 = vpop.f32.mrf.mxu3 }
 0x4fc   :  { %v2343_v2 = vpop.f32.mrf.mxu0  ;;  %v2432_v55 = vpop.f32.mrf.mxu1  ;;  %v2520_v7 = vadd.f32 %v2519_v8, %v2431_v41 }
 0x4fd   :  { %v2344_v6 = vadd.f32 %v4851_v63, %v2343_v2 }
 0x4fe   :  { %v2609_v51 = vadd.f32 %v2608_v52, %v2520_v7 }
 0x4ff   :  { %v2433_v42 = vadd.f32 %v2432_v55, %v2344_v6 }
 0x503   :  { %v2521_v26 = vpop.f32.mrf.mxu2  ;;  %v2610_v20 = vpop.f32.mrf.mxu3 }
 0x504   :  { %v2522_v13 = vadd.f32 %v2521_v26, %v2433_v42  ;;  %v2346_v61 = vpop.f32.mrf.mxu0  ;;  %v2435_v30 = vpop.f32.mrf.mxu1 }
 0x505   :  { %v2347_v27 = vadd.f32 %v4851_v63, %v2346_v61 }
 0x506   :  { %v2611_v49 = vadd.f32 %v2610_v20, %v2522_v13 }
 0x507   :  { %v2436_v5 = vadd.f32 %v2435_v30, %v2347_v27 }
 0x508   :  { %v3463_v50 = vpack.c.bf16 %v2611_v49, %v2609_v51 }
 0x50a   :  { %3514 = vst [vmem:[#allocation7 + $0x40] sm:$0xff] %v3463_v50  }
 0x50b   :  { %v2524_v22 = vpop.f32.mrf.mxu2  ;;  %v2613_v37 = vpop.f32.mrf.mxu3 }
 0x50c   :  { %v2348_v16 = vpop.f32.mrf.mxu0  ;;  %v2437_v10 = vpop.f32.mrf.mxu1  ;;  %v2525_v43 = vadd.f32 %v2524_v22, %v2436_v5 }
 0x50d   :  { %v2349_v29 = vadd.f32 %v4851_v63, %v2348_v16 }
 0x50e   :  { %v2614_v59 = vadd.f32 %v2613_v37, %v2525_v43 }
 0x50f   :  { %v2438_v11 = vadd.f32 %v2437_v10, %v2349_v29 }
 0x513   :  { %v2526_v3 = vpop.f32.mrf.mxu2  ;;  %v2615_v25 = vpop.f32.mrf.mxu3 }
 0x514   :  { %v2527_v4 = vadd.f32 %v2526_v3, %v2438_v11  ;;  %v2351_v1 = vpop.f32.mrf.mxu0  ;;  %v2440_v0 = vpop.f32.mrf.mxu1 }
 0x515   :  { %v2352_v33 = vadd.f32 %v4851_v63, %v2351_v1 }
 0x516   :  { %v2616_v44 = vadd.f32 %v2615_v25, %v2527_v4 }
 0x517   :  { %v2441_v18 = vadd.f32 %v2440_v0, %v2352_v33 }
 0x518   :  { %v3468_v17 = vpack.c.bf16 %v2616_v44, %v2614_v59 }
 0x51a   :  { %3515 = vst [vmem:[#allocation7 + $0x48] sm:$0xff] %v3468_v17  }
 0x51b   :  { %v2529_v40 = vpop.f32.mrf.mxu2  ;;  %v2618_v21 = vpop.f32.mrf.mxu3 }
 0x51c   :  { %v2353_v48 = vpop.f32.mrf.mxu0  ;;  %v2442_v56 = vpop.f32.mrf.mxu1  ;;  %v2530_v38 = vadd.f32 %v2529_v40, %v2441_v18 }
 0x51d   :  { %v2354_v9 = vadd.f32 %v4851_v63, %v2353_v48 }
 0x51e   :  { %v2619_v58 = vadd.f32 %v2618_v21, %v2530_v38 }
 0x51f   :  { %v2443_v36 = vadd.f32 %v2442_v56, %v2354_v9 }
 0x523   :  { %v2531_v12 = vpop.f32.mrf.mxu2  ;;  %v2620_v53 = vpop.f32.mrf.mxu3 }
 0x524   :  { %v2532_v39 = vadd.f32 %v2531_v12, %v2443_v36  ;;  %v2356_v32 = vpop.f32.mrf.mxu0  ;;  %v2445_v23 = vpop.f32.mrf.mxu1 }
 0x525   :  { %v2357_v57 = vadd.f32 %v4851_v63, %v2356_v32 }
 0x526   :  { %v2621_v15 = vadd.f32 %v2620_v53, %v2532_v39 }
 0x527   :  { %v2446_v19 = vadd.f32 %v2445_v23, %v2357_v57 }
 0x528   :  { %v3473_v24 = vpack.c.bf16 %v2621_v15, %v2619_v58 }
 0x52a   :  { %3516 = vst [vmem:[#allocation7 + $0x50] sm:$0xff] %v3473_v24  }
 0x52b   :  { %v2534_v45 = vpop.f32.mrf.mxu2  ;;  %v2623_v31 = vpop.f32.mrf.mxu3 }
 0x52c   :  { %v2358_v14 = vpop.f32.mrf.mxu0  ;;  %v2447_v35 = vpop.f32.mrf.mxu1  ;;  %v2535_v46 = vadd.f32 %v2534_v45, %v2446_v19 }
 0x52d   :  { %v2359_v34 = vadd.f32 %v4851_v63, %v2358_v14 }
 0x52e   :  { %v2624_v60 = vadd.f32 %v2623_v31, %v2535_v46 }
 0x52f   :  { %v2448_v62 = vadd.f32 %v2447_v35, %v2359_v34 }
 0x533   :  { %v2536_v54 = vpop.f32.mrf.mxu2  ;;  %v2625_v47 = vpop.f32.mrf.mxu3 }
 0x534   :  { %v2537_v28 = vadd.f32 %v2536_v54, %v2448_v62  ;;  %v2361_v8 = vpop.f32.mrf.mxu0  ;;  %v2450_v52 = vpop.f32.mrf.mxu1 }
 0x535   :  { %v2362_v7 = vadd.f32 %v4851_v63, %v2361_v8 }
 0x536   :  { %v2626_v2 = vadd.f32 %v2625_v47, %v2537_v28 }
 0x537   :  { %v2451_v13 = vadd.f32 %v2450_v52, %v2362_v7 }
 0x538   :  { %v3478_v55 = vpack.c.bf16 %v2626_v2, %v2624_v60 }
 0x53a   :  { %3517 = vst [vmem:[#allocation7 + $0x58] sm:$0xff] %v3478_v55  }
 0x53b   :  { %v2539_v6 = vpop.f32.mrf.mxu2  ;;  %v2628_v41 = vpop.f32.mrf.mxu3 }
 0x53c   :  { %v2363_v42 = vpop.f32.mrf.mxu0  ;;  %v2452_v26 = vpop.f32.mrf.mxu1  ;;  %v2540_v61 = vadd.f32 %v2539_v6, %v2451_v13 }
 0x53d   :  { %v2364_v20 = vadd.f32 %v4851_v63, %v2363_v42 }
 0x53e   :  { %v2629_v27 = vadd.f32 %v2628_v41, %v2540_v61 }
 0x53f   :  { %v2453_v30 = vadd.f32 %v2452_v26, %v2364_v20 }
 0x543   :  { %v2541_v51 = vpop.f32.mrf.mxu2  ;;  %v2630_v49 = vpop.f32.mrf.mxu3 }
 0x544   :  { %v2542_v50 = vadd.f32 %v2541_v51, %v2453_v30  ;;  %v2366_v22 = vpop.f32.mrf.mxu0  ;;  %v2455_v37 = vpop.f32.mrf.mxu1 }
 0x545   :  { %v2367_v43 = vadd.f32 %v4851_v63, %v2366_v22 }
 0x546   :  { %v2631_v16 = vadd.f32 %v2630_v49, %v2542_v50 }
 0x547   :  { %v2456_v4 = vadd.f32 %v2455_v37, %v2367_v43 }
 0x548   :  { %v3483_v10 = vpack.c.bf16 %v2631_v16, %v2629_v27 }
 0x54a   :  { %3518 = vst [vmem:[#allocation7 + $0x60] sm:$0xff] %v3483_v10  }
 0x54b   :  { %v2544_v29 = vpop.f32.mrf.mxu2  ;;  %v2633_v5 = vpop.f32.mrf.mxu3 }
 0x54c   :  { %v2368_v11 = vpop.f32.mrf.mxu0  ;;  %v2457_v3 = vpop.f32.mrf.mxu1  ;;  %v2545_v1 = vadd.f32 %v2544_v29, %v2456_v4 }
 0x54d   :  { %v2369_v25 = vadd.f32 %v4851_v63, %v2368_v11 }
 0x54e   :  { %v2634_v33 = vadd.f32 %v2633_v5, %v2545_v1 }
 0x54f   :  { %v2458_v0 = vadd.f32 %v2457_v3, %v2369_v25 }
 0x553   :  { %v2546_v59 = vpop.f32.mrf.mxu2  ;;  %v2635_v44 = vpop.f32.mrf.mxu3 }
 0x554   :  { %v2547_v17 = vadd.f32 %v2546_v59, %v2458_v0  ;;  %v2371_v40 = vpop.f32.mrf.mxu0  ;;  %v2460_v21 = vpop.f32.mrf.mxu1 }
 0x555   :  { %v2372_v38 = vadd.f32 %v4851_v63, %v2371_v40 }
 0x556   :  { %v2636_v48 = vadd.f32 %v2635_v44, %v2547_v17 }
 0x557   :  { %v2461_v39 = vadd.f32 %v2460_v21, %v2372_v38 }
 0x558   :  { %v3488_v56 = vpack.c.bf16 %v2636_v48, %v2634_v33 }
 0x55a   :  { %3519 = vst [vmem:[#allocation7 + $0x68] sm:$0xff] %v3488_v56  }
 0x55b   :  { %v2549_v9 = vpop.f32.mrf.mxu2  ;;  %v2638_v18 = vpop.f32.mrf.mxu3 }
 0x55c   :  { %v2373_v36 = vpop.f32.mrf.mxu0  ;;  %v2462_v12 = vpop.f32.mrf.mxu1  ;;  %v2550_v32 = vadd.f32 %v2549_v9, %v2461_v39 }
 0x55d   :  { %v2374_v53 = vadd.f32 %v4851_v63, %v2373_v36 }
 0x55e   :  { %v2639_v31 = vadd.f32 %v2638_v18, %v2550_v32 }
 0x55f   :  { %v2463_v23 = vadd.f32 %v2462_v12, %v2374_v53 }
 0x563   :  { %v2551_v58 = vpop.f32.mrf.mxu2  ;;  %v2640_v15 = vpop.f32.mrf.mxu3 }
 0x564   :  { %v2552_v24 = vadd.f32 %v2551_v58, %v2463_v23  ;;  %v2376_v45 = vpop.f32.mrf.mxu0  ;;  %v2465_v14 = vpop.f32.mrf.mxu1 }
 0x565   :  { %v2377_v46 = vadd.f32 %v4851_v63, %v2376_v45 }
 0x566   :  { %v2641_v57 = vadd.f32 %v2640_v15, %v2552_v24 }
 0x567   :  { %v2466_v47 = vadd.f32 %v2465_v14, %v2377_v46 }
 0x568   :  { %v3493_v35 = vpack.c.bf16 %v2641_v57, %v2639_v31 }
 0x56a   :  { %3520 = vst [vmem:[#allocation7 + $0x70] sm:$0xff] %v3493_v35  }
 0x56b   :  { %v2554_v34 = vpop.f32.mrf.mxu2  ;;  %v2643_v19 = vpop.f32.mrf.mxu3 }
 0x56c   :  { %v2378_v62 = vpop.f32.mrf.mxu0  ;;  %v2467_v28 = vpop.f32.mrf.mxu1  ;;  %v2555_v8 = vadd.f32 %v2554_v34, %v2466_v47 }
 0x56d   :  { %v2379_v54 = vadd.f32 %v4851_v63, %v2378_v62 }
 0x56e   :  { %v2644_v6 = vadd.f32 %v2643_v19, %v2555_v8 }
 0x56f   :  { %v2468_v52 = vadd.f32 %v2467_v28, %v2379_v54 }
 0x573   :  { %v2556_v60 = vpop.f32.mrf.mxu2  ;;  %v2645_v55 = vpop.f32.mrf.mxu3 }
 0x574   :  { %v2557_v2 = vadd.f32 %v2556_v60, %v2468_v52 }
 0x576   :  { %v2646_v41 = vadd.f32 %v2645_v55, %v2557_v2 }
 0x578   :  { %v3498_v7 = vpack.c.bf16 %v2646_v41, %v2644_v6 }
 0x57a   :  { %3521 = vst [vmem:[#allocation7 + $0x78] sm:$0xff] %v3498_v7  }
 0x57b   :  { %2724 = dma.vmem_to_hbm [thread:$0]  %s2717_s21, 2048, %s2719_s24, [#allocation4], %s3756_s13, %s3756_s13, %s3757_s14  }
 0x57c   :  { %3750 = dma.done.wait [#allocation4], 2048  }
 0x57d   :  { %3751 = vsyncadd [#allocation4], 4294965248 }
 0x57e   :  { %2729 = vsyncpa [#allocation3], 1 }
 0x57f   :  { %2730 = vsyncpa [#allocation6], 1 }
 0x580   :  { %2731 = vsyncpa [#allocation4], 1 }

</bundles_post_ra>
